<compile_context>
chip_gen: v7x
topology: tpu7x:2x2x1
jax: 0.10.0
libtpu: 0.0.40
codegen_flags: <defaults>
</compile_context>

<pallas_src>
import functools
import math

import jax
import jax.numpy as jnp
from jax import lax
from jax.experimental import pallas as pl
from jax.experimental.pallas import tpu as pltpu

_VMEM = pl.BlockSpec(memory_space=pltpu.MemorySpace.VMEM)
_INV_SQRT2 = 1.0 / math.sqrt(2.0)


# ------------------------------ in-kernel helpers ------------------------------

def _layernorm(x, g, b, eps):
    mean = jnp.mean(x, axis=-1, keepdims=True)
    xc = x - mean
    var = jnp.mean(xc * xc, axis=-1, keepdims=True)
    return xc * lax.rsqrt(var + eps) * g + b


def _gelu(x):
    # exact (erf-based) GELU, matching torch.nn.GELU() default
    return 0.5 * x * (1.0 + lax.erf(x * _INV_SQRT2))


# ------------------------------ Pallas kernels ------------------------------

def _embed_kernel(p_ref, w_ref, b_ref, cls_ref, pos_ref, o_ref, *, B, N):
    """Fused PatchEmbed matmul + cls-token prepend + pos-embed add -> (B*T, D) token slab."""
    T = N + 1
    tok = jnp.dot(p_ref[...].astype(jnp.float32), w_ref[...],
                  preferred_element_type=jnp.float32) + b_ref[...]        # (B*N, D)
    pos = pos_ref[...].astype(jnp.float32)                                # (T, D)
    cls_row = (cls_ref[...].astype(jnp.float32) + pos[0:1, :]).astype(o_ref.dtype)  # (1, D)
    for b in range(B):
        o_ref[b * T:b * T + 1, :] = cls_row
        o_ref[b * T + 1:(b + 1) * T, :] = (
            tok[b * N:(b + 1) * N, :] + pos[1:, :]).astype(o_ref.dtype)


def _block_kernel(h_ref,
                  ln1_g_ref, ln1_b_ref, qkv_w_ref, qkv_b_ref,
                  proj_w_ref, proj_b_ref, ln2_g_ref, ln2_b_ref,
                  fc1_w_ref, fc1_b_ref, fc2_w_ref, fc2_b_ref,
                  o_ref, attn_scr, *, B, T, heads, eps):
    """One full transformer encoder block, all intermediates in vregs/VMEM."""
    D = h_ref.shape[-1]
    dh = D // heads
    scale = 1.0 / math.sqrt(dh)

    x = h_ref[...].astype(jnp.float32)                                    # (B*T, D)

    # LN1 -> fused QKV projection
    ln1 = _layernorm(x, ln1_g_ref[...], ln1_b_ref[...], eps)
    qkv = jnp.dot(ln1, qkv_w_ref[...], preferred_element_type=jnp.float32) + qkv_b_ref[...]

    # Multi-head attention: per-(batch, head) 2-D dots; head outputs scattered into VMEM scratch
    # (in-kernel q/k/v split replaces the previous XLA reshape/transpose glue).
    for b in range(B):
        r0, r1 = b * T, (b + 1) * T
        for hd in range(heads):
            c0 = hd * dh
            q = qkv[r0:r1, c0:c0 + dh]                                    # (T, dh)
            k = qkv[r0:r1, D + c0:D + c0 + dh]                            # (T, dh)
            v = qkv[r0:r1, 2 * D + c0:2 * D + c0 + dh]                    # (T, dh)
            s = lax.dot_general(q, k, (((1,), (1,)), ((), ())),
                                preferred_element_type=jnp.float32) * scale   # (T, T)
            s = s - jnp.max(s, axis=-1, keepdims=True)
            p = jnp.exp(s)
            p = p * pl.reciprocal(jnp.sum(p, axis=-1, keepdims=True), approx=True)
            a = jnp.dot(p, v, preferred_element_type=jnp.float32)         # (T, dh)
            attn_scr[r0:r1, c0:c0 + dh] = a

    # attention output projection + residual
    x2 = jnp.dot(attn_scr[...], proj_w_ref[...], preferred_element_type=jnp.float32)
    x2 = x2 + proj_b_ref[...] + x

    # LN2 -> MLP (GELU) + residual
    ln2 = _layernorm(x2, ln2_g_ref[...], ln2_b_ref[...], eps)
    m1 = jnp.dot(ln2, fc1_w_ref[...], preferred_element_type=jnp.float32) + fc1_b_ref[...]
    m1 = _gelu(m1)
    x3 = jnp.dot(m1, fc2_w_ref[...], preferred_element_type=jnp.float32) + fc2_b_ref[...] + x2

    o_ref[...] = x3.astype(o_ref.dtype)


def _final_feat_kernel(h_ref, g_ref, b_ref, o_ref, *, T, eps):
    """Final LayerNorm + cls-token pooling (extraction=True path)."""
    B = o_ref.shape[0]
    x = h_ref[...].astype(jnp.float32)
    feat = _layernorm(x, g_ref[...], b_ref[...], eps)         # LN over all tokens == timm norm
    for b in range(B):
        o_ref[b:b + 1, :] = feat[b * T:b * T + 1, :].astype(o_ref.dtype)


def _final_heads_kernel(h_ref, g_ref, b_ref, hw_ref, hb_ref, o_ref, *, T, sig_col, eps):
    """Final LayerNorm + cls pooling + fused fc1/fc2/sigmoid(fc3) heads (lane-dense output)."""
    B = o_ref.shape[0]
    x = h_ref[...].astype(jnp.float32)                                    # (B*T, D)
    feat = _layernorm(x, g_ref[...], b_ref[...], eps)
    y = jnp.dot(feat, hw_ref[...], preferred_element_type=jnp.float32) + hb_ref[...]  # (B*T, Npad)
    col = lax.broadcasted_iota(jnp.int32, y.shape, 1)
    y = jnp.where(col == sig_col, jax.nn.sigmoid(y), y)       # sigmoid only on the fc3 column
    for b in range(B):                                        # cls-token pooling
        o_ref[b:b + 1, :] = y[b * T:b * T + 1, :].astype(o_ref.dtype)


# ------------------------------ model definition ------------------------------

CFG = dict(
    img=16, patch=8, chans=3,      # -> 4 patches + cls token = 5 tokens
    dim=32, heads=4, depth=2, mlp_ratio=4,
    num_target_genes=10, num_aux_genes=6,
)


def init_params(key, cfg):
    P, C, D = cfg["patch"], cfg["chans"], cfg["dim"]
    T = (cfg["img"] // P) ** 2 + 1
    mlp = cfg["mlp_ratio"] * D
    nt, na = cfg["num_target_genes"], cfg["num_aux_genes"]

    keys = iter(jax.random.split(key, 64))
    w = lambda shape: 0.02 * jax.random.normal(next(keys), shape, jnp.float32)
    z = lambda shape: jnp.zeros(shape, jnp.float32)
    o = lambda shape: jnp.ones(shape, jnp.float32)

    params = dict(
        patch_w=w((C * P * P, D)), patch_b=z((D,)),
        cls=w((1, 1, D)), pos=w((1, T, D)),
        lnf_g=o((D,)), lnf_b=z((D,)),
        h1_w=w((D, nt)), h1_b=z((nt,)),
        h2_w=w((D, na)), h2_b=z((na,)),
        h3_w=w((D, 1)), h3_b=z((1,)),
        blocks=[],
    )
    for _ in range(cfg["depth"]):
        params["blocks"].append(dict(
            ln1_g=o((D,)), ln1_b=z((D,)),
            qkv_w=w((D, 3 * D)), qkv_b=z((3 * D,)),
            proj_w=w((D, D)), proj_b=z((D,)),
            ln2_g=o((D,)), ln2_b=z((D,)),
            fc1_w=w((D, mlp)), fc1_b=z((mlp,)),
            fc2_w=w((mlp, D)), fc2_b=z((D,)),
        ))
    return params


def aux_annotate_vit_forward(x, params, cfg, extraction=False):
    B, C, H, W = x.shape
    P, D, nH = cfg["patch"], cfg["dim"], cfg["heads"]
    gh, gw = H // P, W // P
    N = gh * gw
    T = N + 1
    nt, na = cfg["num_target_genes"], cfg["num_aux_genes"]
    eps = 1e-6

    # NCHW -> (B*N, C*P*P) patches in (C, pH, pW) flatten order (matches Conv2d patch-embed).
    patches = (x.reshape(B, C, gh, P, gw, P)
                 .transpose(0, 2, 4, 1, 3, 5)
                 .reshape(B * N, C * P * P))

    # fused patch-embed + cls token + pos embed -> (B*T, D) token slab (pos_drop: eval -> identity)
    h = pl.pallas_call(
        functools.partial(_embed_kernel, B=B, N=N),
        out_shape=jax.ShapeDtypeStruct((B * T, D), x.dtype),
        in_specs=[_VMEM] * 5,
        out_specs=_VMEM,
    )(patches, params["patch_w"], params["patch_b"].reshape(1, D),
      params["cls"].reshape(1, D), params["pos"].reshape(T, D))

    # one fused pallas_call per transformer block
    for blk in params["blocks"]:
        mlp = blk["fc1_w"].shape[1]
        h = pl.pallas_call(
            functools.partial(_block_kernel, B=B, T=T, heads=nH, eps=eps),
            out_shape=jax.ShapeDtypeStruct((B * T, D), x.dtype),
            in_specs=[_VMEM] * 13,
            out_specs=_VMEM,
            scratch_shapes=[pltpu.VMEM((B * T, D), jnp.float32)],
        )(h,
          blk["ln1_g"].reshape(1, D), blk["ln1_b"].reshape(1, D),
          blk["qkv_w"], blk["qkv_b"].reshape(1, 3 * D),
          blk["proj_w"], blk["proj_b"].reshape(1, D),
          blk["ln2_g"].reshape(1, D), blk["ln2_b"].reshape(1, D),
          blk["fc1_w"], blk["fc1_b"].reshape(1, mlp),
          blk["fc2_w"], blk["fc2_b"].reshape(1, D))

    if extraction:
        # final LN + cls pooling; base_model.head = Identity
        return pl.pallas_call(
            functools.partial(_final_feat_kernel, T=T, eps=eps),
            out_shape=jax.ShapeDtypeStruct((B, D), x.dtype),
            in_specs=[_VMEM] * 3,
            out_specs=_VMEM,
        )(h, params["lnf_g"].reshape(1, D), params["lnf_b"].reshape(1, D))

    # fuse the 3 head linears into one lane-dense matmul (zero-pad output dim to 128 lanes)
    n_out = nt + na + 1
    n_pad = ((n_out + 127) // 128) * 128
    head_w = jnp.concatenate([params["h1_w"], params["h2_w"], params["h3_w"]], axis=1)
    head_w = jnp.pad(head_w, ((0, 0), (0, n_pad - n_out)))
    head_b = jnp.concatenate([params["h1_b"], params["h2_b"], params["h3_b"]], axis=0)
    head_b = jnp.pad(head_b, (0, n_pad - n_out)).reshape(1, n_pad)

    y = pl.pallas_call(
        functools.partial(_final_heads_kernel, T=T, sig_col=nt + na, eps=eps),
        out_shape=jax.ShapeDtypeStruct((B, n_pad), x.dtype),
        in_specs=[_VMEM] * 5,
        out_specs=_VMEM,
    )(h, params["lnf_g"].reshape(1, D), params["lnf_b"].reshape(1, D), head_w, head_b)

    out1 = y[:, :nt]
    out2 = y[:, nt:nt + na]
    out3 = y[:, nt + na:nt + na + 1]
    return out1, out2, out3


# ------------------------------ main ------------------------------

if __name__ == "__main__":
    key = jax.random.PRNGKey(0)
    k_x, k_p = jax.random.split(key)
    x = jax.random.normal(k_x, (2, CFG["chans"], CFG["img"], CFG["img"]), jnp.float32)
    params = init_params(k_p, CFG)

    fwd = jax.jit(functools.partial(aux_annotate_vit_forward, cfg=CFG, extraction=False))
    o1, o2, o3 = fwd(x, params)
    jax.block_until_ready((o1, o2, o3))

    assert o1.shape == (2, CFG["num_target_genes"])
    assert o2.shape == (2, CFG["num_aux_genes"])
    assert o3.shape == (2, 1)
    assert bool(jnp.all(jnp.isfinite(o1)) & jnp.all(jnp.isfinite(o2)))
    assert bool(jnp.all((o3 >= 0.0) & (o3 <= 1.0)))

    # extraction=True path (returns the backbone feature vector)
    feat = jax.jit(functools.partial(aux_annotate_vit_forward, cfg=CFG, extraction=True))(x, params)
    jax.block_until_ready(feat)
    assert feat.shape == (2, CFG["dim"])
    assert bool(jnp.all(jnp.isfinite(feat)))

    print("KERNEL_OK")
</pallas_src>

<mosaic_0001>
module attributes {stable_mosaic.version = 11 : i64} {
  func.func @_embed_kernel(%arg0: memref<8x192xf32, #tpu.memory_space<vmem>>, %arg1: memref<192x32xf32, #tpu.memory_space<vmem>>, %arg2: memref<1x32xf32, #tpu.memory_space<vmem>>, %arg3: memref<1x32xf32, #tpu.memory_space<vmem>>, %arg4: memref<5x32xf32, #tpu.memory_space<vmem>>, %arg5: memref<10x32xf32, #tpu.memory_space<vmem>>) attributes {dimension_semantics = [], scalar_prefetch = 0 : i64, scratch_operands = 0 : i64, tpu.core_type = #tpu.core_type<tc>} {
    %c0 = arith.constant 0 : index
    %c0_0 = arith.constant 0 : index
    %0 = vector.load %arg0[%c0, %c0_0] : memref<8x192xf32, #tpu.memory_space<vmem>>, vector<8x192xf32>
    %c0_1 = arith.constant 0 : index
    %c0_2 = arith.constant 0 : index
    %1 = vector.load %arg1[%c0_1, %c0_2] : memref<192x32xf32, #tpu.memory_space<vmem>>, vector<192x32xf32>
    %cst = arith.constant dense<0.000000e+00> : vector<8x32xf32>
    %2 = tpu.matmul %0, %1, %cst {dimension_numbers = #tpu.dot_dimension_numbers<[1], [0], [0], [1], [0, 0, 1, 1], [], []>} : vector<8x192xf32>, vector<192x32xf32>, vector<8x32xf32> -> vector<8x32xf32>
    %c0_3 = arith.constant 0 : index
    %c0_4 = arith.constant 0 : index
    %3 = vector.load %arg2[%c0_3, %c0_4] : memref<1x32xf32, #tpu.memory_space<vmem>>, vector<1x32xf32>
    %4 = vector.broadcast %3 : vector<1x32xf32> to vector<8x32xf32>
    %5 = arith.addf %2, %4 : vector<8x32xf32>
    %c0_5 = arith.constant 0 : index
    %c0_6 = arith.constant 0 : index
    %6 = vector.load %arg4[%c0_5, %c0_6] : memref<5x32xf32, #tpu.memory_space<vmem>>, vector<5x32xf32>
    %c0_7 = arith.constant 0 : index
    %c0_8 = arith.constant 0 : index
    %7 = vector.load %arg3[%c0_7, %c0_8] : memref<1x32xf32, #tpu.memory_space<vmem>>, vector<1x32xf32>
    %8 = vector.extract_strided_slice %6 {offsets = [0, 0], sizes = [1, 32], strides = [1, 1]} : vector<5x32xf32> to vector<1x32xf32>
    %9 = arith.addf %7, %8 : vector<1x32xf32>
    %c0_9 = arith.constant 0 : index
    %c0_10 = arith.constant 0 : index
    %10 = vector.load %arg5[%c0_9, %c0_10] : memref<10x32xf32, #tpu.memory_space<vmem>>, vector<1x32xf32>
    tpu.vector_store %arg5[%c0_9, %c0_10], %9 {strides = array<i32>} : memref<10x32xf32, #tpu.memory_space<vmem>>, vector<1x32xf32>,
    %11 = vector.extract_strided_slice %5 {offsets = [0, 0], sizes = [4, 32], strides = [1, 1]} : vector<8x32xf32> to vector<4x32xf32>
    %12 = vector.extract_strided_slice %6 {offsets = [1, 0], sizes = [4, 32], strides = [1, 1]} : vector<5x32xf32> to vector<4x32xf32>
    %13 = arith.addf %11, %12 : vector<4x32xf32>
    %c1 = arith.constant 1 : index
    %c0_11 = arith.constant 0 : index
    %14 = vector.load %arg5[%c1, %c0_11] : memref<10x32xf32, #tpu.memory_space<vmem>>, vector<4x32xf32>
    tpu.vector_store %arg5[%c1, %c0_11], %13 {strides = array<i32>} : memref<10x32xf32, #tpu.memory_space<vmem>>, vector<4x32xf32>,
    %c5 = arith.constant 5 : index
    %c0_12 = arith.constant 0 : index
    %15 = vector.load %arg5[%c5, %c0_12] : memref<10x32xf32, #tpu.memory_space<vmem>>, vector<1x32xf32>
    tpu.vector_store %arg5[%c5, %c0_12], %9 {strides = array<i32>} : memref<10x32xf32, #tpu.memory_space<vmem>>, vector<1x32xf32>,
    %16 = vector.extract_strided_slice %5 {offsets = [4, 0], sizes = [4, 32], strides = [1, 1]} : vector<8x32xf32> to vector<4x32xf32>
    %17 = vector.extract_strided_slice %6 {offsets = [1, 0], sizes = [4, 32], strides = [1, 1]} : vector<5x32xf32> to vector<4x32xf32>
    %18 = arith.addf %16, %17 : vector<4x32xf32>
    %c6 = arith.constant 6 : index
    %c0_13 = arith.constant 0 : index
    %19 = vector.load %arg5[%c6, %c0_13] : memref<10x32xf32, #tpu.memory_space<vmem>>, vector<4x32xf32>
    tpu.vector_store %arg5[%c6, %c0_13], %18 {strides = array<i32>} : memref<10x32xf32, #tpu.memory_space<vmem>>, vector<4x32xf32>,
    return
  }
}

module attributes {stable_mosaic.version = 11 : i64} {
  func.func @_block_kernel(%arg0: memref<10x32xf32, #tpu.memory_space<vmem>>, %arg1: memref<1x32xf32, #tpu.memory_space<vmem>>, %arg2: memref<1x32xf32, #tpu.memory_space<vmem>>, %arg3: memref<32x96xf32, #tpu.memory_space<vmem>>, %arg4: memref<1x96xf32, #tpu.memory_space<vmem>>, %arg5: memref<32x32xf32, #tpu.memory_space<vmem>>, %arg6: memref<1x32xf32, #tpu.memory_space<vmem>>, %arg7: memref<1x32xf32, #tpu.memory_space<vmem>>, %arg8: memref<1x32xf32, #tpu.memory_space<vmem>>, %arg9: memref<32x128xf32, #tpu.memory_space<vmem>>, %arg10: memref<1x128xf32, #tpu.memory_space<vmem>>, %arg11: memref<128x32xf32, #tpu.memory_space<vmem>>, %arg12: memref<1x32xf32, #tpu.memory_space<vmem>>, %arg13: memref<10x32xf32, #tpu.memory_space<vmem>>, %arg14: memref<10x32xf32, #tpu.memory_space<vmem>>) attributes {dimension_semantics = [], scalar_prefetch = 0 : i64, scratch_operands = 1 : i64, tpu.core_type = #tpu.core_type<tc>} {
    %c0 = arith.constant 0 : index
    %c0_0 = arith.constant 0 : index
    %0 = vector.load %arg0[%c0, %c0_0] : memref<10x32xf32, #tpu.memory_space<vmem>>, vector<10x32xf32>
    %c0_1 = arith.constant 0 : index
    %c0_2 = arith.constant 0 : index
    %1 = vector.load %arg1[%c0_1, %c0_2] : memref<1x32xf32, #tpu.memory_space<vmem>>, vector<1x32xf32>
    %c0_3 = arith.constant 0 : index
    %c0_4 = arith.constant 0 : index
    %2 = vector.load %arg2[%c0_3, %c0_4] : memref<1x32xf32, #tpu.memory_space<vmem>>, vector<1x32xf32>
    %cst = arith.constant dense<0.000000e+00> : vector<10xf32>
    %3 = vector.multi_reduction <add>, %0, %cst [1] : vector<10x32xf32> to vector<10xf32>
    %4 = vector.shape_cast %3 : vector<10xf32> to vector<10x1xf32>
    %cst_5 = arith.constant 3.200000e+01 : f32
    %5 = vector.broadcast %cst_5 : f32 to vector<10x1xf32>
    %6 = arith.divf %4, %5 : vector<10x1xf32>
    %7 = vector.broadcast %6 : vector<10x1xf32> to vector<10x32xf32>
    %8 = arith.subf %0, %7 : vector<10x32xf32>
    %9 = arith.mulf %8, %8 : vector<10x32xf32>
    %cst_6 = arith.constant dense<0.000000e+00> : vector<10xf32>
    %10 = vector.multi_reduction <add>, %9, %cst_6 [1] : vector<10x32xf32> to vector<10xf32>
    %11 = vector.shape_cast %10 : vector<10xf32> to vector<10x1xf32>
    %cst_7 = arith.constant 3.200000e+01 : f32
    %12 = vector.broadcast %cst_7 : f32 to vector<10x1xf32>
    %13 = arith.divf %11, %12 : vector<10x1xf32>
    %cst_8 = arith.constant 9.99999997E-7 : f32
    %14 = vector.broadcast %cst_8 : f32 to vector<10x1xf32>
    %15 = arith.addf %13, %14 : vector<10x1xf32>
    %16 = math.rsqrt %15 : vector<10x1xf32>
    %17 = vector.broadcast %16 : vector<10x1xf32> to vector<10x32xf32>
    %18 = arith.mulf %8, %17 : vector<10x32xf32>
    %19 = vector.broadcast %1 : vector<1x32xf32> to vector<10x32xf32>
    %20 = arith.mulf %18, %19 : vector<10x32xf32>
    %21 = vector.broadcast %2 : vector<1x32xf32> to vector<10x32xf32>
    %22 = arith.addf %20, %21 : vector<10x32xf32>
    %c0_9 = arith.constant 0 : index
    %c0_10 = arith.constant 0 : index
    %23 = vector.load %arg3[%c0_9, %c0_10] : memref<32x96xf32, #tpu.memory_space<vmem>>, vector<32x96xf32>
    %cst_11 = arith.constant dense<0.000000e+00> : vector<10x96xf32>
    %24 = tpu.matmul %22, %23, %cst_11 {dimension_numbers = #tpu.dot_dimension_numbers<[1], [0], [0], [1], [0, 0, 1, 1], [], []>} : vector<10x32xf32>, vector<32x96xf32>, vector<10x96xf32> -> vector<10x96xf32>
    %c0_12 = arith.constant 0 : index
    %c0_13 = arith.constant 0 : index
    %25 = vector.load %arg4[%c0_12, %c0_13] : memref<1x96xf32, #tpu.memory_space<vmem>>, vector<1x96xf32>
    %26 = vector.broadcast %25 : vector<1x96xf32> to vector<10x96xf32>
    %27 = arith.addf %24, %26 : vector<10x96xf32>
    %28 = vector.extract_strided_slice %27 {offsets = [0, 0], sizes = [5, 8], strides = [1, 1]} : vector<10x96xf32> to vector<5x8xf32>
    %29 = vector.extract_strided_slice %27 {offsets = [0, 32], sizes = [5, 8], strides = [1, 1]} : vector<10x96xf32> to vector<5x8xf32>
    %30 = vector.extract_strided_slice %27 {offsets = [0, 64], sizes = [5, 8], strides = [1, 1]} : vector<10x96xf32> to vector<5x8xf32>
    %cst_14 = arith.constant dense<0.000000e+00> : vector<5x5xf32>
    %31 = tpu.matmul %28, %29, %cst_14 {dimension_numbers = #tpu.dot_dimension_numbers<[1], [1], [0], [0], [0, 0, 1, 0], [], []>} : vector<5x8xf32>, vector<5x8xf32>, vector<5x5xf32> -> vector<5x5xf32>
    %cst_15 = arith.constant 0.353553385 : f32
    %32 = vector.broadcast %cst_15 : f32 to vector<5x5xf32>
    %33 = arith.mulf %31, %32 : vector<5x5xf32>
    %cst_16 = arith.constant dense<0xFF800000> : vector<5xf32>
    %34 = vector.multi_reduction <maximumf>, %33, %cst_16 [1] : vector<5x5xf32> to vector<5xf32>
    %35 = vector.shape_cast %34 : vector<5xf32> to vector<5x1xf32>
    %36 = vector.broadcast %35 : vector<5x1xf32> to vector<5x5xf32>
    %37 = arith.subf %33, %36 : vector<5x5xf32>
    %38 = math.exp %37 : vector<5x5xf32>
    %cst_17 = arith.constant dense<0.000000e+00> : vector<5xf32>
    %39 = vector.multi_reduction <add>, %38, %cst_17 [1] : vector<5x5xf32> to vector<5xf32>
    %40 = vector.shape_cast %39 : vector<5xf32> to vector<5x1xf32>
    %41 = tpu.reciprocal %40 {approx = true} : vector<5x1xf32> -> vector<5x1xf32>
    %42 = vector.broadcast %41 : vector<5x1xf32> to vector<5x5xf32>
    %43 = arith.mulf %38, %42 : vector<5x5xf32>
    %cst_18 = arith.constant dense<0.000000e+00> : vector<5x8xf32>
    %44 = tpu.matmul %43, %30, %cst_18 {dimension_numbers = #tpu.dot_dimension_numbers<[1], [0], [0], [1], [0, 0, 1, 1], [], []>} : vector<5x5xf32>, vector<5x8xf32>, vector<5x8xf32> -> vector<5x8xf32>
    %c0_19 = arith.constant 0 : index
    %c0_20 = arith.constant 0 : index
    %45 = vector.load %arg14[%c0_19, %c0_20] : memref<10x32xf32, #tpu.memory_space<vmem>>, vector<5x8xf32>
    tpu.vector_store %arg14[%c0_19, %c0_20], %44 {strides = array<i32>} : memref<10x32xf32, #tpu.memory_space<vmem>>, vector<5x8xf32>,
    %46 = vector.extract_strided_slice %27 {offsets = [0, 8], sizes = [5, 8], strides = [1, 1]} : vector<10x96xf32> to vector<5x8xf32>
    %47 = vector.extract_strided_slice %27 {offsets = [0, 40], sizes = [5, 8], strides = [1, 1]} : vector<10x96xf32> to vector<5x8xf32>
    %48 = vector.extract_strided_slice %27 {offsets = [0, 72], sizes = [5, 8], strides = [1, 1]} : vector<10x96xf32> to vector<5x8xf32>
    %cst_21 = arith.constant dense<0.000000e+00> : vector<5x5xf32>
    %49 = tpu.matmul %46, %47, %cst_21 {dimension_numbers = #tpu.dot_dimension_numbers<[1], [1], [0], [0], [0, 0, 1, 0], [], []>} : vector<5x8xf32>, vector<5x8xf32>, vector<5x5xf32> -> vector<5x5xf32>
    %cst_22 = arith.constant 0.353553385 : f32
    %50 = vector.broadcast %cst_22 : f32 to vector<5x5xf32>
    %51 = arith.mulf %49, %50 : vector<5x5xf32>
    %cst_23 = arith.constant dense<0xFF800000> : vector<5xf32>
    %52 = vector.multi_reduction <maximumf>, %51, %cst_23 [1] : vector<5x5xf32> to vector<5xf32>
    %53 = vector.shape_cast %52 : vector<5xf32> to vector<5x1xf32>
    %54 = vector.broadcast %53 : vector<5x1xf32> to vector<5x5xf32>
    %55 = arith.subf %51, %54 : vector<5x5xf32>
    %56 = math.exp %55 : vector<5x5xf32>
    %cst_24 = arith.constant dense<0.000000e+00> : vector<5xf32>
    %57 = vector.multi_reduction <add>, %56, %cst_24 [1] : vector<5x5xf32> to vector<5xf32>
    %58 = vector.shape_cast %57 : vector<5xf32> to vector<5x1xf32>
    %59 = tpu.reciprocal %58 {approx = true} : vector<5x1xf32> -> vector<5x1xf32>
    %60 = vector.broadcast %59 : vector<5x1xf32> to vector<5x5xf32>
    %61 = arith.mulf %56, %60 : vector<5x5xf32>
    %cst_25 = arith.constant dense<0.000000e+00> : vector<5x8xf32>
    %62 = tpu.matmul %61, %48, %cst_25 {dimension_numbers = #tpu.dot_dimension_numbers<[1], [0], [0], [1], [0, 0, 1, 1], [], []>} : vector<5x5xf32>, vector<5x8xf32>, vector<5x8xf32> -> vector<5x8xf32>
    %c0_26 = arith.constant 0 : index
    %c8 = arith.constant 8 : index
    %63 = vector.load %arg14[%c0_26, %c8] : memref<10x32xf32, #tpu.memory_space<vmem>>, vector<5x8xf32>
    tpu.vector_store %arg14[%c0_26, %c8], %62 {strides = array<i32>} : memref<10x32xf32, #tpu.memory_space<vmem>>, vector<5x8xf32>,
    %64 = vector.extract_strided_slice %27 {offsets = [0, 16], sizes = [5, 8], strides = [1, 1]} : vector<10x96xf32> to vector<5x8xf32>
    %65 = vector.extract_strided_slice %27 {offsets = [0, 48], sizes = [5, 8], strides = [1, 1]} : vector<10x96xf32> to vector<5x8xf32>
    %66 = vector.extract_strided_slice %27 {offsets = [0, 80], sizes = [5, 8], strides = [1, 1]} : vector<10x96xf32> to vector<5x8xf32>
    %cst_27 = arith.constant dense<0.000000e+00> : vector<5x5xf32>
    %67 = tpu.matmul %64, %65, %cst_27 {dimension_numbers = #tpu.dot_dimension_numbers<[1], [1], [0], [0], [0, 0, 1, 0], [], []>} : vector<5x8xf32>, vector<5x8xf32>, vector<5x5xf32> -> vector<5x5xf32>
    %cst_28 = arith.constant 0.353553385 : f32
    %68 = vector.broadcast %cst_28 : f32 to vector<5x5xf32>
    %69 = arith.mulf %67, %68 : vector<5x5xf32>
    %cst_29 = arith.constant dense<0xFF800000> : vector<5xf32>
    %70 = vector.multi_reduction <maximumf>, %69, %cst_29 [1] : vector<5x5xf32> to vector<5xf32>
    %71 = vector.shape_cast %70 : vector<5xf32> to vector<5x1xf32>
    %72 = vector.broadcast %71 : vector<5x1xf32> to vector<5x5xf32>
    %73 = arith.subf %69, %72 : vector<5x5xf32>
    %74 = math.exp %73 : vector<5x5xf32>
    %cst_30 = arith.constant dense<0.000000e+00> : vector<5xf32>
    %75 = vector.multi_reduction <add>, %74, %cst_30 [1] : vector<5x5xf32> to vector<5xf32>
    %76 = vector.shape_cast %75 : vector<5xf32> to vector<5x1xf32>
    %77 = tpu.reciprocal %76 {approx = true} : vector<5x1xf32> -> vector<5x1xf32>
    %78 = vector.broadcast %77 : vector<5x1xf32> to vector<5x5xf32>
    %79 = arith.mulf %74, %78 : vector<5x5xf32>
    %cst_31 = arith.constant dense<0.000000e+00> : vector<5x8xf32>
    %80 = tpu.matmul %79, %66, %cst_31 {dimension_numbers = #tpu.dot_dimension_numbers<[1], [0], [0], [1], [0, 0, 1, 1], [], []>} : vector<5x5xf32>, vector<5x8xf32>, vector<5x8xf32> -> vector<5x8xf32>
    %c0_32 = arith.constant 0 : index
    %c16 = arith.constant 16 : index
    %81 = vector.load %arg14[%c0_32, %c16] : memref<10x32xf32, #tpu.memory_space<vmem>>, vector<5x8xf32>
    tpu.vector_store %arg14[%c0_32, %c16], %80 {strides = array<i32>} : memref<10x32xf32, #tpu.memory_space<vmem>>, vector<5x8xf32>,
    %82 = vector.extract_strided_slice %27 {offsets = [0, 24], sizes = [5, 8], strides = [1, 1]} : vector<10x96xf32> to vector<5x8xf32>
    %83 = vector.extract_strided_slice %27 {offsets = [0, 56], sizes = [5, 8], strides = [1, 1]} : vector<10x96xf32> to vector<5x8xf32>
    %84 = vector.extract_strided_slice %27 {offsets = [0, 88], sizes = [5, 8], strides = [1, 1]} : vector<10x96xf32> to vector<5x8xf32>
    %cst_33 = arith.constant dense<0.000000e+00> : vector<5x5xf32>
    %85 = tpu.matmul %82, %83, %cst_33 {dimension_numbers = #tpu.dot_dimension_numbers<[1], [1], [0], [0], [0, 0, 1, 0], [], []>} : vector<5x8xf32>, vector<5x8xf32>, vector<5x5xf32> -> vector<5x5xf32>
    %cst_34 = arith.constant 0.353553385 : f32
    %86 = vector.broadcast %cst_34 : f32 to vector<5x5xf32>
    %87 = arith.mulf %85, %86 : vector<5x5xf32>
    %cst_35 = arith.constant dense<0xFF800000> : vector<5xf32>
    %88 = vector.multi_reduction <maximumf>, %87, %cst_35 [1] : vector<5x5xf32> to vector<5xf32>
    %89 = vector.shape_cast %88 : vector<5xf32> to vector<5x1xf32>
    %90 = vector.broadcast %89 : vector<5x1xf32> to vector<5x5xf32>
    %91 = arith.subf %87, %90 : vector<5x5xf32>
    %92 = math.exp %91 : vector<5x5xf32>
    %cst_36 = arith.constant dense<0.000000e+00> : vector<5xf32>
    %93 = vector.multi_reduction <add>, %92, %cst_36 [1] : vector<5x5xf32> to vector<5xf32>
    %94 = vector.shape_cast %93 : vector<5xf32> to vector<5x1xf32>
    %95 = tpu.reciprocal %94 {approx = true} : vector<5x1xf32> -> vector<5x1xf32>
    %96 = vector.broadcast %95 : vector<5x1xf32> to vector<5x5xf32>
    %97 = arith.mulf %92, %96 : vector<5x5xf32>
    %cst_37 = arith.constant dense<0.000000e+00> : vector<5x8xf32>
    %98 = tpu.matmul %97, %84, %cst_37 {dimension_numbers = #tpu.dot_dimension_numbers<[1], [0], [0], [1], [0, 0, 1, 1], [], []>} : vector<5x5xf32>, vector<5x8xf32>, vector<5x8xf32> -> vector<5x8xf32>
    %c0_38 = arith.constant 0 : index
    %c24 = arith.constant 24 : index
    %99 = vector.load %arg14[%c0_38, %c24] : memref<10x32xf32, #tpu.memory_space<vmem>>, vector<5x8xf32>
    tpu.vector_store %arg14[%c0_38, %c24], %98 {strides = array<i32>} : memref<10x32xf32, #tpu.memory_space<vmem>>, vector<5x8xf32>,
    %100 = vector.extract_strided_slice %27 {offsets = [5, 0], sizes = [5, 8], strides = [1, 1]} : vector<10x96xf32> to vector<5x8xf32>
    %101 = vector.extract_strided_slice %27 {offsets = [5, 32], sizes = [5, 8], strides = [1, 1]} : vector<10x96xf32> to vector<5x8xf32>
    %102 = vector.extract_strided_slice %27 {offsets = [5, 64], sizes = [5, 8], strides = [1, 1]} : vector<10x96xf32> to vector<5x8xf32>
    %cst_39 = arith.constant dense<0.000000e+00> : vector<5x5xf32>
    %103 = tpu.matmul %100, %101, %cst_39 {dimension_numbers = #tpu.dot_dimension_numbers<[1], [1], [0], [0], [0, 0, 1, 0], [], []>} : vector<5x8xf32>, vector<5x8xf32>, vector<5x5xf32> -> vector<5x5xf32>
    %cst_40 = arith.constant 0.353553385 : f32
    %104 = vector.broadcast %cst_40 : f32 to vector<5x5xf32>
    %105 = arith.mulf %103, %104 : vector<5x5xf32>
    %cst_41 = arith.constant dense<0xFF800000> : vector<5xf32>
    %106 = vector.multi_reduction <maximumf>, %105, %cst_41 [1] : vector<5x5xf32> to vector<5xf32>
    %107 = vector.shape_cast %106 : vector<5xf32> to vector<5x1xf32>
    %108 = vector.broadcast %107 : vector<5x1xf32> to vector<5x5xf32>
    %109 = arith.subf %105, %108 : vector<5x5xf32>
    %110 = math.exp %109 : vector<5x5xf32>
    %cst_42 = arith.constant dense<0.000000e+00> : vector<5xf32>
    %111 = vector.multi_reduction <add>, %110, %cst_42 [1] : vector<5x5xf32> to vector<5xf32>
    %112 = vector.shape_cast %111 : vector<5xf32> to vector<5x1xf32>
    %113 = tpu.reciprocal %112 {approx = true} : vector<5x1xf32> -> vector<5x1xf32>
    %114 = vector.broadcast %113 : vector<5x1xf32> to vector<5x5xf32>
    %115 = arith.mulf %110, %114 : vector<5x5xf32>
    %cst_43 = arith.constant dense<0.000000e+00> : vector<5x8xf32>
    %116 = tpu.matmul %115, %102, %cst_43 {dimension_numbers = #tpu.dot_dimension_numbers<[1], [0], [0], [1], [0, 0, 1, 1], [], []>} : vector<5x5xf32>, vector<5x8xf32>, vector<5x8xf32> -> vector<5x8xf32>
    %c5 = arith.constant 5 : index
    %c0_44 = arith.constant 0 : index
    %117 = vector.load %arg14[%c5, %c0_44] : memref<10x32xf32, #tpu.memory_space<vmem>>, vector<5x8xf32>
    tpu.vector_store %arg14[%c5, %c0_44], %116 {strides = array<i32>} : memref<10x32xf32, #tpu.memory_space<vmem>>, vector<5x8xf32>,
    %118 = vector.extract_strided_slice %27 {offsets = [5, 8], sizes = [5, 8], strides = [1, 1]} : vector<10x96xf32> to vector<5x8xf32>
    %119 = vector.extract_strided_slice %27 {offsets = [5, 40], sizes = [5, 8], strides = [1, 1]} : vector<10x96xf32> to vector<5x8xf32>
    %120 = vector.extract_strided_slice %27 {offsets = [5, 72], sizes = [5, 8], strides = [1, 1]} : vector<10x96xf32> to vector<5x8xf32>
    %cst_45 = arith.constant dense<0.000000e+00> : vector<5x5xf32>
    %121 = tpu.matmul %118, %119, %cst_45 {dimension_numbers = #tpu.dot_dimension_numbers<[1], [1], [0], [0], [0, 0, 1, 0], [], []>} : vector<5x8xf32>, vector<5x8xf32>, vector<5x5xf32> -> vector<5x5xf32>
    %cst_46 = arith.constant 0.353553385 : f32
    %122 = vector.broadcast %cst_46 : f32 to vector<5x5xf32>
    %123 = arith.mulf %121, %122 : vector<5x5xf32>
    %cst_47 = arith.constant dense<0xFF800000> : vector<5xf32>
    %124 = vector.multi_reduction <maximumf>, %123, %cst_47 [1] : vector<5x5xf32> to vector<5xf32>
    %125 = vector.shape_cast %124 : vector<5xf32> to vector<5x1xf32>
    %126 = vector.broadcast %125 : vector<5x1xf32> to vector<5x5xf32>
    %127 = arith.subf %123, %126 : vector<5x5xf32>
    %128 = math.exp %127 : vector<5x5xf32>
    %cst_48 = arith.constant dense<0.000000e+00> : vector<5xf32>
    %129 = vector.multi_reduction <add>, %128, %cst_48 [1] : vector<5x5xf32> to vector<5xf32>
    %130 = vector.shape_cast %129 : vector<5xf32> to vector<5x1xf32>
    %131 = tpu.reciprocal %130 {approx = true} : vector<5x1xf32> -> vector<5x1xf32>
    %132 = vector.broadcast %131 : vector<5x1xf32> to vector<5x5xf32>
    %133 = arith.mulf %128, %132 : vector<5x5xf32>
    %cst_49 = arith.constant dense<0.000000e+00> : vector<5x8xf32>
    %134 = tpu.matmul %133, %120, %cst_49 {dimension_numbers = #tpu.dot_dimension_numbers<[1], [0], [0], [1], [0, 0, 1, 1], [], []>} : vector<5x5xf32>, vector<5x8xf32>, vector<5x8xf32> -> vector<5x8xf32>
    %c5_50 = arith.constant 5 : index
    %c8_51 = arith.constant 8 : index
    %135 = vector.load %arg14[%c5_50, %c8_51] : memref<10x32xf32, #tpu.memory_space<vmem>>, vector<5x8xf32>
    tpu.vector_store %arg14[%c5_50, %c8_51], %134 {strides = array<i32>} : memref<10x32xf32, #tpu.memory_space<vmem>>, vector<5x8xf32>,
    %136 = vector.extract_strided_slice %27 {offsets = [5, 16], sizes = [5, 8], strides = [1, 1]} : vector<10x96xf32> to vector<5x8xf32>
    %137 = vector.extract_strided_slice %27 {offsets = [5, 48], sizes = [5, 8], strides = [1, 1]} : vector<10x96xf32> to vector<5x8xf32>
    %138 = vector.extract_strided_slice %27 {offsets = [5, 80], sizes = [5, 8], strides = [1, 1]} : vector<10x96xf32> to vector<5x8xf32>
    %cst_52 = arith.constant dense<0.000000e+00> : vector<5x5xf32>
    %139 = tpu.matmul %136, %137, %cst_52 {dimension_numbers = #tpu.dot_dimension_numbers<[1], [1], [0], [0], [0, 0, 1, 0], [], []>} : vector<5x8xf32>, vector<5x8xf32>, vector<5x5xf32> -> vector<5x5xf32>
    %cst_53 = arith.constant 0.353553385 : f32
    %140 = vector.broadcast %cst_53 : f32 to vector<5x5xf32>
    %141 = arith.mulf %139, %140 : vector<5x5xf32>
    %cst_54 = arith.constant dense<0xFF800000> : vector<5xf32>
    %142 = vector.multi_reduction <maximumf>, %141, %cst_54 [1] : vector<5x5xf32> to vector<5xf32>
    %143 = vector.shape_cast %142 : vector<5xf32> to vector<5x1xf32>
    %144 = vector.broadcast %143 : vector<5x1xf32> to vector<5x5xf32>
    %145 = arith.subf %141, %144 : vector<5x5xf32>
    %146 = math.exp %145 : vector<5x5xf32>
    %cst_55 = arith.constant dense<0.000000e+00> : vector<5xf32>
    %147 = vector.multi_reduction <add>, %146, %cst_55 [1] : vector<5x5xf32> to vector<5xf32>
    %148 = vector.shape_cast %147 : vector<5xf32> to vector<5x1xf32>
    %149 = tpu.reciprocal %148 {approx = true} : vector<5x1xf32> -> vector<5x1xf32>
    %150 = vector.broadcast %149 : vector<5x1xf32> to vector<5x5xf32>
    %151 = arith.mulf %146, %150 : vector<5x5xf32>
    %cst_56 = arith.constant dense<0.000000e+00> : vector<5x8xf32>
    %152 = tpu.matmul %151, %138, %cst_56 {dimension_numbers = #tpu.dot_dimension_numbers<[1], [0], [0], [1], [0, 0, 1, 1], [], []>} : vector<5x5xf32>, vector<5x8xf32>, vector<5x8xf32> -> vector<5x8xf32>
    %c5_57 = arith.constant 5 : index
    %c16_58 = arith.constant 16 : index
    %153 = vector.load %arg14[%c5_57, %c16_58] : memref<10x32xf32, #tpu.memory_space<vmem>>, vector<5x8xf32>
    tpu.vector_store %arg14[%c5_57, %c16_58], %152 {strides = array<i32>} : memref<10x32xf32, #tpu.memory_space<vmem>>, vector<5x8xf32>,
    %154 = vector.extract_strided_slice %27 {offsets = [5, 24], sizes = [5, 8], strides = [1, 1]} : vector<10x96xf32> to vector<5x8xf32>
    %155 = vector.extract_strided_slice %27 {offsets = [5, 56], sizes = [5, 8], strides = [1, 1]} : vector<10x96xf32> to vector<5x8xf32>
    %156 = vector.extract_strided_slice %27 {offsets = [5, 88], sizes = [5, 8], strides = [1, 1]} : vector<10x96xf32> to vector<5x8xf32>
    %cst_59 = arith.constant dense<0.000000e+00> : vector<5x5xf32>
    %157 = tpu.matmul %154, %155, %cst_59 {dimension_numbers = #tpu.dot_dimension_numbers<[1], [1], [0], [0], [0, 0, 1, 0], [], []>} : vector<5x8xf32>, vector<5x8xf32>, vector<5x5xf32> -> vector<5x5xf32>
    %cst_60 = arith.constant 0.353553385 : f32
    %158 = vector.broadcast %cst_60 : f32 to vector<5x5xf32>
    %159 = arith.mulf %157, %158 : vector<5x5xf32>
    %cst_61 = arith.constant dense<0xFF800000> : vector<5xf32>
    %160 = vector.multi_reduction <maximumf>, %159, %cst_61 [1] : vector<5x5xf32> to vector<5xf32>
    %161 = vector.shape_cast %160 : vector<5xf32> to vector<5x1xf32>
    %162 = vector.broadcast %161 : vector<5x1xf32> to vector<5x5xf32>
    %163 = arith.subf %159, %162 : vector<5x5xf32>
    %164 = math.exp %163 : vector<5x5xf32>
    %cst_62 = arith.constant dense<0.000000e+00> : vector<5xf32>
    %165 = vector.multi_reduction <add>, %164, %cst_62 [1] : vector<5x5xf32> to vector<5xf32>
    %166 = vector.shape_cast %165 : vector<5xf32> to vector<5x1xf32>
    %167 = tpu.reciprocal %166 {approx = true} : vector<5x1xf32> -> vector<5x1xf32>
    %168 = vector.broadcast %167 : vector<5x1xf32> to vector<5x5xf32>
    %169 = arith.mulf %164, %168 : vector<5x5xf32>
    %cst_63 = arith.constant dense<0.000000e+00> : vector<5x8xf32>
    %170 = tpu.matmul %169, %156, %cst_63 {dimension_numbers = #tpu.dot_dimension_numbers<[1], [0], [0], [1], [0, 0, 1, 1], [], []>} : vector<5x5xf32>, vector<5x8xf32>, vector<5x8xf32> -> vector<5x8xf32>
    %c5_64 = arith.constant 5 : index
    %c24_65 = arith.constant 24 : index
    %171 = vector.load %arg14[%c5_64, %c24_65] : memref<10x32xf32, #tpu.memory_space<vmem>>, vector<5x8xf32>
    tpu.vector_store %arg14[%c5_64, %c24_65], %170 {strides = array<i32>} : memref<10x32xf32, #tpu.memory_space<vmem>>, vector<5x8xf32>,
    %c0_66 = arith.constant 0 : index
    %c0_67 = arith.constant 0 : index
    %172 = vector.load %arg14[%c0_66, %c0_67] : memref<10x32xf32, #tpu.memory_space<vmem>>, vector<10x32xf32>
    %c0_68 = arith.constant 0 : index
    %c0_69 = arith.constant 0 : index
    %173 = vector.load %arg5[%c0_68, %c0_69] : memref<32x32xf32, #tpu.memory_space<vmem>>, vector<32x32xf32>
    %cst_70 = arith.constant dense<0.000000e+00> : vector<10x32xf32>
    %174 = tpu.matmul %172, %173, %cst_70 {dimension_numbers = #tpu.dot_dimension_numbers<[1], [0], [0], [1], [0, 0, 1, 1], [], []>} : vector<10x32xf32>, vector<32x32xf32>, vector<10x32xf32> -> vector<10x32xf32>
    %c0_71 = arith.constant 0 : index
    %c0_72 = arith.constant 0 : index
    %175 = vector.load %arg6[%c0_71, %c0_72] : memref<1x32xf32, #tpu.memory_space<vmem>>, vector<1x32xf32>
    %176 = vector.broadcast %175 : vector<1x32xf32> to vector<10x32xf32>
    %177 = arith.addf %174, %176 : vector<10x32xf32>
    %178 = arith.addf %177, %0 : vector<10x32xf32>
    %c0_73 = arith.constant 0 : index
    %c0_74 = arith.constant 0 : index
    %179 = vector.load %arg7[%c0_73, %c0_74] : memref<1x32xf32, #tpu.memory_space<vmem>>, vector<1x32xf32>
    %c0_75 = arith.constant 0 : index
    %c0_76 = arith.constant 0 : index
    %180 = vector.load %arg8[%c0_75, %c0_76] : memref<1x32xf32, #tpu.memory_space<vmem>>, vector<1x32xf32>
    %cst_77 = arith.constant dense<0.000000e+00> : vector<10xf32>
    %181 = vector.multi_reduction <add>, %178, %cst_77 [1] : vector<10x32xf32> to vector<10xf32>
    %182 = vector.shape_cast %181 : vector<10xf32> to vector<10x1xf32>
    %cst_78 = arith.constant 3.200000e+01 : f32
    %183 = vector.broadcast %cst_78 : f32 to vector<10x1xf32>
    %184 = arith.divf %182, %183 : vector<10x1xf32>
    %185 = vector.broadcast %184 : vector<10x1xf32> to vector<10x32xf32>
    %186 = arith.subf %178, %185 : vector<10x32xf32>
    %187 = arith.mulf %186, %186 : vector<10x32xf32>
    %cst_79 = arith.constant dense<0.000000e+00> : vector<10xf32>
    %188 = vector.multi_reduction <add>, %187, %cst_79 [1] : vector<10x32xf32> to vector<10xf32>
    %189 = vector.shape_cast %188 : vector<10xf32> to vector<10x1xf32>
    %cst_80 = arith.constant 3.200000e+01 : f32
    %190 = vector.broadcast %cst_80 : f32 to vector<10x1xf32>
    %191 = arith.divf %189, %190 : vector<10x1xf32>
    %cst_81 = arith.constant 9.99999997E-7 : f32
    %192 = vector.broadcast %cst_81 : f32 to vector<10x1xf32>
    %193 = arith.addf %191, %192 : vector<10x1xf32>
    %194 = math.rsqrt %193 : vector<10x1xf32>
    %195 = vector.broadcast %194 : vector<10x1xf32> to vector<10x32xf32>
    %196 = arith.mulf %186, %195 : vector<10x32xf32>
    %197 = vector.broadcast %179 : vector<1x32xf32> to vector<10x32xf32>
    %198 = arith.mulf %196, %197 : vector<10x32xf32>
    %199 = vector.broadcast %180 : vector<1x32xf32> to vector<10x32xf32>
    %200 = arith.addf %198, %199 : vector<10x32xf32>
    %c0_82 = arith.constant 0 : index
    %c0_83 = arith.constant 0 : index
    %201 = vector.load %arg9[%c0_82, %c0_83] : memref<32x128xf32, #tpu.memory_space<vmem>>, vector<32x128xf32>
    %cst_84 = arith.constant dense<0.000000e+00> : vector<10x128xf32>
    %202 = tpu.matmul %200, %201, %cst_84 {dimension_numbers = #tpu.dot_dimension_numbers<[1], [0], [0], [1], [0, 0, 1, 1], [], []>} : vector<10x32xf32>, vector<32x128xf32>, vector<10x128xf32> -> vector<10x128xf32>
    %c0_85 = arith.constant 0 : index
    %c0_86 = arith.constant 0 : index
    %203 = vector.load %arg10[%c0_85, %c0_86] : memref<1x128xf32, #tpu.memory_space<vmem>>, vector<1x128xf32>
    %204 = vector.broadcast %203 : vector<1x128xf32> to vector<10x128xf32>
    %205 = arith.addf %202, %204 : vector<10x128xf32>
    %cst_87 = arith.constant 5.000000e-01 : f32
    %206 = vector.broadcast %cst_87 : f32 to vector<10x128xf32>
    %207 = arith.mulf %206, %205 : vector<10x128xf32>
    %cst_88 = arith.constant 0.707106769 : f32
    %208 = vector.broadcast %cst_88 : f32 to vector<10x128xf32>
    %209 = arith.mulf %205, %208 : vector<10x128xf32>
    %210 = math.erf %209 : vector<10x128xf32>
    %cst_89 = arith.constant 1.000000e+00 : f32
    %211 = vector.broadcast %cst_89 : f32 to vector<10x128xf32>
    %212 = arith.addf %211, %210 : vector<10x128xf32>
    %213 = arith.mulf %207, %212 : vector<10x128xf32>
    %c0_90 = arith.constant 0 : index
    %c0_91 = arith.constant 0 : index
    %214 = vector.load %arg11[%c0_90, %c0_91] : memref<128x32xf32, #tpu.memory_space<vmem>>, vector<128x32xf32>
    %cst_92 = arith.constant dense<0.000000e+00> : vector<10x32xf32>
    %215 = tpu.matmul %213, %214, %cst_92 {dimension_numbers = #tpu.dot_dimension_numbers<[1], [0], [0], [1], [0, 0, 1, 1], [], []>} : vector<10x128xf32>, vector<128x32xf32>, vector<10x32xf32> -> vector<10x32xf32>
    %c0_93 = arith.constant 0 : index
    %c0_94 = arith.constant 0 : index
    %216 = vector.load %arg12[%c0_93, %c0_94] : memref<1x32xf32, #tpu.memory_space<vmem>>, vector<1x32xf32>
    %217 = vector.broadcast %216 : vector<1x32xf32> to vector<10x32xf32>
    %218 = arith.addf %215, %217 : vector<10x32xf32>
    %219 = arith.addf %218, %178 : vector<10x32xf32>
    %c0_95 = arith.constant 0 : index
    %c0_96 = arith.constant 0 : index
    %220 = vector.load %arg13[%c0_95, %c0_96] : memref<10x32xf32, #tpu.memory_space<vmem>>, vector<10x32xf32>
    tpu.vector_store %arg13[%c0_95, %c0_96], %219 {strides = array<i32>} : memref<10x32xf32, #tpu.memory_space<vmem>>, vector<10x32xf32>,
    return
  }
}

module attributes {stable_mosaic.version = 11 : i64} {
  func.func @_final_heads_kernel(%arg0: memref<10x32xf32, #tpu.memory_space<vmem>>, %arg1: memref<1x32xf32, #tpu.memory_space<vmem>>, %arg2: memref<1x32xf32, #tpu.memory_space<vmem>>, %arg3: memref<32x128xf32, #tpu.memory_space<vmem>>, %arg4: memref<1x128xf32, #tpu.memory_space<vmem>>, %arg5: memref<2x128xf32, #tpu.memory_space<vmem>>) attributes {dimension_semantics = [], scalar_prefetch = 0 : i64, scratch_operands = 0 : i64, tpu.core_type = #tpu.core_type<tc>} {
    %c0 = arith.constant 0 : index
    %c0_0 = arith.constant 0 : index
    %0 = vector.load %arg0[%c0, %c0_0] : memref<10x32xf32, #tpu.memory_space<vmem>>, vector<10x32xf32>
    %c0_1 = arith.constant 0 : index
    %c0_2 = arith.constant 0 : index
    %1 = vector.load %arg1[%c0_1, %c0_2] : memref<1x32xf32, #tpu.memory_space<vmem>>, vector<1x32xf32>
    %c0_3 = arith.constant 0 : index
    %c0_4 = arith.constant 0 : index
    %2 = vector.load %arg2[%c0_3, %c0_4] : memref<1x32xf32, #tpu.memory_space<vmem>>, vector<1x32xf32>
    %cst = arith.constant dense<0.000000e+00> : vector<10xf32>
    %3 = vector.multi_reduction <add>, %0, %cst [1] : vector<10x32xf32> to vector<10xf32>
    %4 = vector.shape_cast %3 : vector<10xf32> to vector<10x1xf32>
    %cst_5 = arith.constant 3.200000e+01 : f32
    %5 = vector.broadcast %cst_5 : f32 to vector<10x1xf32>
    %6 = arith.divf %4, %5 : vector<10x1xf32>
    %7 = vector.broadcast %6 : vector<10x1xf32> to vector<10x32xf32>
    %8 = arith.subf %0, %7 : vector<10x32xf32>
    %9 = arith.mulf %8, %8 : vector<10x32xf32>
    %cst_6 = arith.constant dense<0.000000e+00> : vector<10xf32>
    %10 = vector.multi_reduction <add>, %9, %cst_6 [1] : vector<10x32xf32> to vector<10xf32>
    %11 = vector.shape_cast %10 : vector<10xf32> to vector<10x1xf32>
    %cst_7 = arith.constant 3.200000e+01 : f32
    %12 = vector.broadcast %cst_7 : f32 to vector<10x1xf32>
    %13 = arith.divf %11, %12 : vector<10x1xf32>
    %cst_8 = arith.constant 9.99999997E-7 : f32
    %14 = vector.broadcast %cst_8 : f32 to vector<10x1xf32>
    %15 = arith.addf %13, %14 : vector<10x1xf32>
    %16 = math.rsqrt %15 : vector<10x1xf32>
    %17 = vector.broadcast %16 : vector<10x1xf32> to vector<10x32xf32>
    %18 = arith.mulf %8, %17 : vector<10x32xf32>
    %19 = vector.broadcast %1 : vector<1x32xf32> to vector<10x32xf32>
    %20 = arith.mulf %18, %19 : vector<10x32xf32>
    %21 = vector.broadcast %2 : vector<1x32xf32> to vector<10x32xf32>
    %22 = arith.addf %20, %21 : vector<10x32xf32>
    %c0_9 = arith.constant 0 : index
    %c0_10 = arith.constant 0 : index
    %23 = vector.load %arg3[%c0_9, %c0_10] : memref<32x128xf32, #tpu.memory_space<vmem>>, vector<32x128xf32>
    %cst_11 = arith.constant dense<0.000000e+00> : vector<10x128xf32>
    %24 = tpu.matmul %22, %23, %cst_11 {dimension_numbers = #tpu.dot_dimension_numbers<[1], [0], [0], [1], [0, 0, 1, 1], [], []>} : vector<10x32xf32>, vector<32x128xf32>, vector<10x128xf32> -> vector<10x128xf32>
    %c0_12 = arith.constant 0 : index
    %c0_13 = arith.constant 0 : index
    %25 = vector.load %arg4[%c0_12, %c0_13] : memref<1x128xf32, #tpu.memory_space<vmem>>, vector<1x128xf32>
    %26 = vector.broadcast %25 : vector<1x128xf32> to vector<10x128xf32>
    %27 = arith.addf %24, %26 : vector<10x128xf32>
    %28 = tpu.iota {dimensions = array<i32: 1>} : vector<10x128xi32>
    %c16_i32 = arith.constant 16 : i32
    %29 = vector.broadcast %c16_i32 : i32 to vector<10x128xi32>
    %30 = arith.cmpi eq, %28, %29 : vector<10x128xi32>
    %31 = arith.negf %27 : vector<10x128xf32>
    %32 = math.exp %31 : vector<10x128xf32>
    %cst_14 = arith.constant 1.000000e+00 : f32
    %33 = vector.broadcast %cst_14 : f32 to vector<10x128xf32>
    %34 = arith.addf %33, %32 : vector<10x128xf32>
    %35 = arith.divf %33, %34 : vector<10x128xf32>
    %36 = arith.select %30, %35, %27 : vector<10x128xi1>, vector<10x128xf32>
    %37 = vector.extract_strided_slice %36 {offsets = [0, 0], sizes = [1, 128], strides = [1, 1]} : vector<10x128xf32> to vector<1x128xf32>
    %c0_15 = arith.constant 0 : index
    %c0_16 = arith.constant 0 : index
    %38 = vector.load %arg5[%c0_15, %c0_16] : memref<2x128xf32, #tpu.memory_space<vmem>>, vector<1x128xf32>
    tpu.vector_store %arg5[%c0_15, %c0_16], %37 {strides = array<i32>} : memref<2x128xf32, #tpu.memory_space<vmem>>, vector<1x128xf32>,
    %39 = vector.extract_strided_slice %36 {offsets = [5, 0], sizes = [1, 128], strides = [1, 1]} : vector<10x128xf32> to vector<1x128xf32>
    %c1 = arith.constant 1 : index
    %c0_17 = arith.constant 0 : index
    %40 = vector.load %arg5[%c1, %c0_17] : memref<2x128xf32, #tpu.memory_space<vmem>>, vector<1x128xf32>
    tpu.vector_store %arg5[%c1, %c0_17], %39 {strides = array<i32>} : memref<2x128xf32, #tpu.memory_space<vmem>>, vector<1x128xf32>,
    return
  }
}

</mosaic_0001>

<bundles_post_ra>
// kernel: aux_annotate_vit_forward.7
= control target key start
LH: loop header
LB: loop body
LE: loop exit
PB: predicated region body
PF: predicated region fallthrough
CT: control target
= control target key end

     0   :  { %vm24_vm0 = vcmask 261120   ;;  %vm28_vm1 = vcmask 254976   ;;  %v160_v43 = vlaneseq  ;;  %s282_s0 = inlined_call_operand.vmem [shape: f32[10,32], index: 0, kind: input, shape index: {}]   ;;  %s283_s3 = inlined_call_operand.vmem [shape: f32[32,128], index: 3, kind: input, shape index: {}]   ;;  %s284_s1 = inlined_call_operand.vmem [shape: f32[1,32], index: 1, kind: input, shape index: {}]   ;;  %s285_s2 = inlined_call_operand.vmem [shape: f32[1,32], index: 2, kind: input, shape index: {}]   ;;  %s286_s4 = inlined_call_operand.vmem [shape: f32[1,128], index: 4, kind: input, shape index: {}]   ;;  %s287_s5 = inlined_call_operand.vmem [shape: f32[2,128], index: 5, kind: output, shape index: {}]  }
   0x1   :  { %v20_v0 = vld [vmem:[%s282_s0] sm:$0xff]  ;;  %v21_v1 = vld [vmem:[%s282_s0 + $0x8] sm:$0x3]  ;;  %v71_v16 = vld [vmem:[%s283_s3 + $0x10] sm:$0xff] }
   0x2   :  { %v25_v2 = vsel %vm24_vm0, %v20_v0, 0.0  ;;  %v29_v3 = vsel %vm28_vm1, %v21_v1, 0.0  ;;  %v69_v14 = vld [vmem:[%s283_s3] sm:$0xff]  ;;  %v70_v15 = vld [vmem:[%s283_s3 + $0x8] sm:$0xff]  ;;  %v72_v18 = vld [vmem:[%s283_s3 + $0x18] sm:$0xff]  ;;  %v161_v44 = vand.u32 127, %v160_v43 }
   0x3   :  { %26 = vadd.xlane.f32.xlu0 %v25_v2  ;;  %v199_v17 = vpack.c.bf16 %v70_v15, %v69_v14  ;;  %v203_v19 = vpack.c.bf16 %v72_v18, %v71_v16  ;;  %v176_v27 = vld [vmem:[%s284_s1] ss:$0 sm:$0xff] }
   0x4   :  { %v177_v29 = vld [vmem:[%s285_s2] ss:$0 sm:$0xff]  ;;  %vm162_vm2 = vcmp.eq.s32.totalorder %v161_v44, 16 }
   0x5   :  { %200 = vmatprep.subr.bf16.mxu0 %v199_v17  ;;  %v178_v36 = vld [vmem:[%s286_s4] ss:$0 sm:$0xff] }
   0x6   :  { %202 = vmatpush3.bf16.msra.mxu0 %v199_v17 }
   0x7   :  { %30 = vadd.xlane.f32.xlu0 %v29_v3  ;;  %204 = vmatprep.subr.bf16.mxu0 %v203_v19 }
   0xa   :  { %206 = vmatpush3.bf16.msra.mxu0 %v203_v19 }
  0x90   :  { %v27_v4 = vpop.xlane.xlu0 %26 }
  0x91   :  { %v33_v5 = vmul.f32 0.03125, %v27_v4 }
  0x93   :  { %v35_v6 = vsub.f32 %v20_v0, %v33_v5 }
  0x94   :  { %v31_v7 = vpop.xlane.xlu0 %30 }
  0x95   :  { %v34_v8 = vmul.f32 0.03125, %v31_v7  ;;  %v37_v9 = vmul.f32 %v35_v6, %v35_v6 }
  0x97   :  { %v36_v10 = vsub.f32 %v21_v1, %v34_v8  ;;  %v39_v11 = vsel %vm24_vm0, %v37_v9, 0.0 }
  0x98   :  { %40 = vadd.xlane.f32.xlu1 %v39_v11 }
  0x99   :  { %v38_v12 = vmul.f32 %v36_v10, %v36_v10 }
  0x9b   :  { %v42_v13 = vsel %vm28_vm1, %v38_v12, 0.0 }
  0x9c   :  { %43 = vadd.xlane.f32.xlu1 %v42_v13 }
 0x125   :  { %v41_v20 = vpop.xlane.xlu1 %40 }
 0x126   :  { %v45_v21 = vmul.f32 0.03125, %v41_v20 }
 0x128   :  { %v47_v22 = vadd.f32 1e-06, %v45_v21 }
 0x129   :  { %v44_v23 = vpop.xlane.xlu1 %43 }
 0x12a   :  { %207 = vrsqrt.f32 %v47_v22  ;;  %v46_v24 = vmul.f32 0.03125, %v44_v23 }
 0x12c   :  { %v48_v25 = vadd.f32 1e-06, %v46_v24 }
 0x12e   :  { %209 = vrsqrt.f32 %v48_v25 }
 0x134   :  { %v208_v26 = vpop.eup %207 }
 0x135   :  { %v51_v28 = vmul.f32 %v208_v26, %v35_v6 }
 0x137   :  { %v59_v30 = vmul.f32 %v176_v27, %v51_v28 }
 0x138   :  { %v210_v31 = vpop.eup %209 }
 0x139   :  { %v52_v32 = vmul.f32 %v210_v31, %v36_v10  ;;  %v67_v33 = vadd.f32 %v177_v29, %v59_v30 }
 0x13b   :  { %v60_v34 = vmul.f32 %v176_v27, %v52_v32  ;;  %196 = vmatprep.mubr.msk.f32.mxu0 %vm24_vm0, %v67_v33 }
 0x13d   :  { %v68_v35 = vadd.f32 %v177_v29, %v60_v34 }
 0x13f   :  { %197 = vmatmul.mubr.msk.f32.vlgmr.msra.gmra.mrb[0].mxu0 %vm24_vm0, %v68_v35 }
 0x212   :  { %v198_v37 = vpop.f32.mrb[0].mxu0 }
 0x213   :  { %v152_v38 = vpop.f32.mrb[1].mxu0 }
 0x214   :  { %v153_v39 = vadd.f32 %v178_v36, %v152_v38 }
 0x216   :  { %v181_v40 = vmul.f32 -1.442695, %v153_v39 }
 0x218   :  { %211 = vpow2.f32 %v181_v40 }
 0x222   :  { %v212_v41 = vpop.eup %211 }
 0x223   :  { %v166_v42 = vadd.f32 1.0, %v212_v41 }
 0x225   :  { %213 = vrcp.f32 %v166_v42 }
 0x22f   :  { %v214_v45 = vpop.eup %213 }
 0x230   :  { %v169_v46 = vsel %vm162_vm2, %v214_v45, %v153_v39 }
 0x231   :  { %170 = vst [vmem:[%s287_s5] sm:$0x1] %v169_v46  ;;  %171 = vst [vmem:[%s287_s5 - $0x4] sm:$0x20] %v169_v46 }

// kernel: aux_annotate_vit_forward.4
= control target key start
LH: loop header
LB: loop body
LE: loop exit
PB: predicated region body
PF: predicated region fallthrough
CT: control target
= control target key end

     0   :  { %v187_v0 = vmov 0.0|0.0   ;;  %vm53_vm0 = vcmask 523264   ;;  %vm130_vm1 = vcmask 253952   ;;  %vm136_vm2 = vcmask 257024   ;;  %s329_s1 = inlined_call_operand.vmem [shape: f32[192,32], index: 1, kind: input, shape index: {}]   ;;  %s330_s0 = inlined_call_operand.vmem [shape: f32[8,192], index: 0, kind: input, shape index: {}]   ;;  %s331_s3 = inlined_call_operand.vmem [shape: f32[1,32], index: 3, kind: input, shape index: {}]   ;;  %s332_s4 = inlined_call_operand.vmem [shape: f32[5,32], index: 4, kind: input, shape index: {}]   ;;  %s333_s5 = inlined_call_operand.vmem [shape: f32[10,32], index: 5, kind: output, shape index: {}]   ;;  %s334_s2 = inlined_call_operand.vmem [shape: f32[1,32], index: 2, kind: input, shape index: {}]  }
   0x1   :  { %150 = vmatprep.subr.bf16.mxu0 %v187_v0  ;;  %v22_v1 = vld [vmem:[%s329_s1] sm:$0xff]  ;;  %v23_v2 = vld [vmem:[%s329_s1 + $0x8] sm:$0xff]  ;;  %v24_v3 = vld [vmem:[%s329_s1 + $0x10] sm:$0xff]  ;;  %vm142_vm3 = vcmask 261124  }
   0x2   :  { %v151_v4 = vpack.c.bf16 %v23_v2, %v22_v1  ;;  %v25_v5 = vld [vmem:[%s329_s1 + $0x18] sm:$0xff]  ;;  %v26_v7 = vld [vmem:[%s329_s1 + $0x20] sm:$0xff]  ;;  %v27_v8 = vld [vmem:[%s329_s1 + $0x28] sm:$0xff] }
   0x3   :  { %v154_v6 = vpack.c.bf16 %v25_v5, %v24_v3  ;;  %v157_v9 = vpack.c.bf16 %v27_v8, %v26_v7  ;;  %v28_v10 = vld [vmem:[%s329_s1 + $0x30] sm:$0xff]  ;;  %v29_v11 = vld [vmem:[%s329_s1 + $0x38] sm:$0xff]  ;;  %v21_v12 = vld [vmem:[%s330_s0 + $0x8] sm:$0xff] }
   0x4   :  { %152 = vmatpush1.bf16.msra.mxu0 %v151_v4  ;;  %149 = vmatprep.mubr.msk.f32.mxu0 %vm53_vm0, %v21_v12  ;;  %v160_v13 = vpack.c.bf16 %v29_v11, %v28_v10  ;;  %v30_v14 = vld [vmem:[%s329_s1 + $0x40] sm:$0xff]  ;;  %v31_v15 = vld [vmem:[%s329_s1 + $0x48] sm:$0xff]  ;;  %v32_v17 = vld [vmem:[%s329_s1 + $0x50] sm:$0xff] }
   0x5   :  { %153 = vmatprep.subr.bf16.mxu0 %v187_v0  ;;  %v163_v16 = vpack.c.bf16 %v31_v15, %v30_v14  ;;  %v33_v18 = vld [vmem:[%s329_s1 + $0x58] sm:$0xff]  ;;  %v34_v20 = vld [vmem:[%s329_s1 + $0x60] sm:$0xff]  ;;  %v35_v21 = vld [vmem:[%s329_s1 + $0x68] sm:$0xff] }
   0x6   :  { %v166_v19 = vpack.c.bf16 %v33_v18, %v32_v17  ;;  %v169_v22 = vpack.c.bf16 %v35_v21, %v34_v20  ;;  %v36_v23 = vld [vmem:[%s329_s1 + $0x70] sm:$0xff]  ;;  %v37_v24 = vld [vmem:[%s329_s1 + $0x78] sm:$0xff]  ;;  %v38_v26 = vld [vmem:[%s329_s1 + $0x80] sm:$0xff] }
   0x7   :  { %v172_v25 = vpack.c.bf16 %v37_v24, %v36_v23  ;;  %v39_v27 = vld [vmem:[%s329_s1 + $0x88] sm:$0xff]  ;;  %v40_v29 = vld [vmem:[%s329_s1 + $0x90] sm:$0xff]  ;;  %v41_v30 = vld [vmem:[%s329_s1 + $0x98] sm:$0xff] }
   0x8   :  { %155 = vmatpush1.bf16.msra.mxu0 %v154_v6  ;;  %v175_v28 = vpack.c.bf16 %v39_v27, %v38_v26  ;;  %v178_v31 = vpack.c.bf16 %v41_v30, %v40_v29  ;;  %v42_v32 = vld [vmem:[%s329_s1 + $0xa0] sm:$0xff]  ;;  %v43_v33 = vld [vmem:[%s329_s1 + $0xa8] sm:$0xff]  ;;  %v44_v35 = vld [vmem:[%s329_s1 + $0xb0] sm:$0xff] }
   0x9   :  { %156 = vmatprep.subr.bf16.mxu0 %v187_v0  ;;  %v181_v34 = vpack.c.bf16 %v43_v33, %v42_v32  ;;  %v45_v36 = vld [vmem:[%s329_s1 + $0xb8] sm:$0xff]  ;;  %v20_v38 = vld [vmem:[%s330_s0] sm:$0xff] }
   0xa   :  { %v184_v37 = vpack.c.bf16 %v45_v36, %v44_v35  ;;  %v127_v39 = vld [vmem:[%s332_s4] sm:$0x1f] }
   0xb   :  { %v128_v40 = vld [vmem:[%s331_s3] sm:$0x1]  ;;  %v133_v43 = vrot.slane %v127_v39, 1  ;;  %v139_v44 = vrot.slane %v127_v39, 5 }
   0xc   :  { %158 = vmatpush1.bf16.msra.mxu0 %v157_v9  ;;  %v129_v41 = vadd.f32 %v128_v40, %v127_v39  ;;  %v148_v42 = vld [vmem:[%s334_s2] ss:$0 sm:$0xff] }
   0xd   :  { %159 = vmatprep.subr.bf16.mxu0 %v187_v0 }
   0xe   :  { %131 = vst.msk [vmem:[%s333_s5] sm:$0x1] %vm130_vm1, %v129_v41  ;;  %138 = vst.msk [vmem:[%s333_s5 + $0x5] sm:$0x1] %vm130_vm1, %v129_v41 }
  0x10   :  { %161 = vmatpush1.bf16.msra.mxu0 %v160_v13 }
  0x11   :  { %162 = vmatprep.subr.bf16.mxu0 %v187_v0 }
  0x14   :  { %164 = vmatpush1.bf16.msra.mxu0 %v163_v16 }
  0x15   :  { %165 = vmatprep.subr.bf16.mxu0 %v187_v0 }
  0x18   :  { %167 = vmatpush1.bf16.msra.mxu0 %v166_v19 }
  0x19   :  { %168 = vmatprep.subr.bf16.mxu0 %v187_v0 }
  0x1c   :  { %170 = vmatpush1.bf16.msra.mxu0 %v169_v22 }
  0x1d   :  { %171 = vmatprep.subr.bf16.mxu0 %v187_v0 }
  0x20   :  { %173 = vmatpush1.bf16.msra.mxu0 %v172_v25 }
  0x21   :  { %174 = vmatprep.subr.bf16.mxu0 %v187_v0 }
  0x24   :  { %176 = vmatpush1.bf16.msra.mxu0 %v175_v28 }
  0x25   :  { %177 = vmatprep.subr.bf16.mxu0 %v187_v0 }
  0x28   :  { %179 = vmatpush1.bf16.msra.mxu0 %v178_v31 }
  0x29   :  { %180 = vmatprep.subr.bf16.mxu0 %v187_v0 }
  0x2c   :  { %182 = vmatpush1.bf16.msra.mxu0 %v181_v34 }
  0x2d   :  { %183 = vmatprep.subr.bf16.mxu0 %v187_v0 }
  0x30   :  { %185 = vmatpush1.bf16.msra.mxu0 %v184_v37 }
  0x33   :  { %122 = vmatmul.mubr.f32.vlgmr.msra.gmra.mrb[0].mxu0 %v20_v38 }
 0x106   :  { %v123_v45 = vpop.f32.mrb[0].mxu0 }
 0x107   :  { %v124_v46 = vadd.f32 %v148_v42, %v123_v45  ;;  %v125_v47 = vpop.f32.mrb[1].mxu0 }
 0x109   :  { %v135_v48 = vadd.f32 %v133_v43, %v124_v46  ;;  %v141_v49 = vadd.f32 %v139_v44, %v124_v46 }
 0x10b   :  { %137 = vst.msk [vmem:[%s333_s5 + $0x1] sm:$0xf] %vm136_vm2, %v135_v48 }
 0x10c   :  { %143 = vst.msk [vmem:[%s333_s5 + $0x2] sm:$0xf0] %vm142_vm3, %v141_v49 }

// kernel: aux_annotate_vit_forward.5
= control target key start
LH: loop header
LB: loop body
LE: loop exit
PB: predicated region body
PF: predicated region fallthrough
CT: control target
= control target key end

     0   :  { %vm48_vm0 = vcmask 261120   ;;  %vm52_vm1 = vcmask 254976   ;;  %v2289_v36 = vmov 0.0   ;;  %vm2290_vm2 = vmmov 0   ;;  %s2291_s22 = smov 88   ;;  %s2292_s23 = smov 96   ;;  %s2690_s0 = inlined_call_operand.vmem [shape: f32[10,32], index: 0, kind: input, shape index: {}]   ;;  %s2691_s3 = inlined_call_operand.vmem [shape: f32[32,96], index: 3, kind: input, shape index: {}]   ;;  %s2692_s1 = inlined_call_operand.vmem [shape: f32[1,32], index: 1, kind: input, shape index: {}]   ;;  %s2693_s2 = inlined_call_operand.vmem [shape: f32[1,32], index: 2, kind: input, shape index: {}]   ;;  %s2694_s4 = inlined_call_operand.vmem [shape: f32[1,96], index: 4, kind: input, shape index: {}]   ;;  %s2695_s5 = inlined_call_operand.vmem [shape: f32[32,32], index: 5, kind: input, shape index: {}]   ;;  %s2696_s6 = inlined_call_operand.vmem [shape: f32[1,32], index: 6, kind: input, shape index: {}]   ;;  %s2697_s9 = inlined_call_operand.vmem [shape: f32[32,128], index: 9, kind: input, shape index: {}]   ;;  %s2698_s11 = inlined_call_operand.vmem [shape: f32[128,32], index: 11, kind: input, shape index: {}]   ;;  %s2699_s7 = inlined_call_operand.vmem [shape: f32[1,32], index: 7, kind: input, shape index: {}]   ;;  %s2700_s8 = inlined_call_operand.vmem [shape: f32[1,32], index: 8, kind: input, shape index: {}]   ;;  %s2701_s10 = inlined_call_operand.vmem [shape: f32[1,128], index: 10, kind: input, shape index: {}]   ;;  %s2702_s12 = inlined_call_operand.vmem [shape: f32[1,32], index: 12, kind: input, shape index: {}]   ;;  %s2703_s13 = inlined_call_operand.vmem [shape: f32[10,32], index: 13, kind: output, shape index: {}]  }
   0x1   :  { %v2378_v0 = vld [vmem:[%s2690_s0] sm:$0xff]  ;;  %v2383_v1 = vld [vmem:[%s2690_s0 + $0x8] sm:$0x3]  ;;  %v95_v16 = vld [vmem:[%s2691_s3 + $0x10] sm:$0xff]  ;;  %2046 = vmatprep.subr.mxu0 %v2289_v36  ;;  %2048 = vmatprep.mubr.msk.f32.mxu0 %vm2290_vm2, %v2289_v36  ;;  %s2293_s24 = smov 120   ;;  %s2294_s25 = smov 112  }
   0x2   :  { %v49_v2 = vsel %vm48_vm0, %v2378_v0, 0.0  ;;  %v53_v3 = vsel %vm52_vm1, %v2383_v1, 0.0  ;;  %v93_v14 = vld [vmem:[%s2691_s3] sm:$0xff]  ;;  %v94_v15 = vld [vmem:[%s2691_s3 + $0x8] sm:$0xff]  ;;  %v96_v18 = vld [vmem:[%s2691_s3 + $0x18] sm:$0xff]  ;;  %s2296_s26 = smov 104  }
   0x3   :  { %50 = vadd.xlane.f32.xlu0 %v49_v2  ;;  %v2173_v17 = vpack.c.bf16 %v94_v15, %v93_v14  ;;  %v2177_v19 = vpack.c.bf16 %v96_v18, %v95_v16  ;;  %v1911_v27 = vld [vmem:[%s2692_s1] ss:$0 sm:$0xff]  ;;  %vm877_vm3 = vcmask 1042432   ;;  %s2297_s27 = smov 72   ;;  %vm188_vm4 = vcmask 64512   ;;  %s2298_s28 = smov 64  }
   0x4   :  { %v1912_v29 = vld [vmem:[%s2693_s2] ss:$0 sm:$0xff]  ;;  %vm264_vm5 = vcmask 36864   ;;  %s2299_s0 = smov 48   ;;  %s2300_s29 = smov 40   ;;  %vm282_vm6 = vcmask 1044480  }
   0x5   :  { %2174 = vmatprep.subr.bf16.mxu1 %v2173_v17  ;;  %v1913_v37 = vld [vmem:[%s2694_s4] ss:$0 sm:$0xff]  ;;  %s2295_s4 = smov 80   ;;  %s2301_s30 = smov 56   ;;  %vm278_vm7 = vcmask 39936   ;;  %vm355_vm8 = vcmask 61440  }
   0x6   :  { %2176 = vmatpush3.bf16.msra.mxu1 %v2173_v17  ;;  %s2302_s14 = smov 8   ;;  %s2303_s15 = smov 16   ;;  %vm528_vm9 = vcmask 127040   ;;  %vm701_vm10 = vcmask 192640   ;;  %vm874_vm11 = vcmask 258240  }
   0x7   :  { %54 = vadd.xlane.f32.xlu0 %v53_v3  ;;  %2178 = vmatprep.subr.bf16.mxu1 %v2177_v19  ;;  %s2304_s16 = smov 24  }
   0xa   :  { %2180 = vmatpush3.bf16.msra.mxu1 %v2177_v19 }
   0xb   :  { %2036 = vmatprep.subr.mxu1 %v2289_v36 }
  0x90   :  { %v51_v4 = vpop.xlane.xlu0 %50 }
  0x91   :  { %v57_v5 = vmul.f32 0.03125, %v51_v4 }
  0x93   :  { %v59_v6 = vsub.f32 %v2378_v0, %v57_v5 }
  0x94   :  { %v55_v7 = vpop.xlane.xlu0 %54 }
  0x95   :  { %v58_v8 = vmul.f32 0.03125, %v55_v7  ;;  %v61_v9 = vmul.f32 %v59_v6, %v59_v6 }
  0x97   :  { %v60_v10 = vsub.f32 %v2383_v1, %v58_v8  ;;  %v63_v11 = vsel %vm48_vm0, %v61_v9, 0.0 }
  0x98   :  { %64 = vadd.xlane.f32.xlu1 %v63_v11 }
  0x99   :  { %v62_v12 = vmul.f32 %v60_v10, %v60_v10 }
  0x9b   :  { %v66_v13 = vsel %vm52_vm1, %v62_v12, 0.0 }
  0x9c   :  { %67 = vadd.xlane.f32.xlu1 %v66_v13 }
 0x125   :  { %v65_v20 = vpop.xlane.xlu1 %64 }
 0x126   :  { %v69_v21 = vmul.f32 0.03125, %v65_v20 }
 0x128   :  { %v71_v22 = vadd.f32 1e-06, %v69_v21 }
 0x129   :  { %v68_v23 = vpop.xlane.xlu1 %67 }
 0x12a   :  { %2245 = vrsqrt.f32 %v71_v22  ;;  %v70_v24 = vmul.f32 0.03125, %v68_v23 }
 0x12c   :  { %v72_v25 = vadd.f32 1e-06, %v70_v24 }
 0x12e   :  { %2247 = vrsqrt.f32 %v72_v25 }
 0x134   :  { %v2246_v26 = vpop.eup %2245 }
 0x135   :  { %v75_v28 = vmul.f32 %v2246_v26, %v59_v6 }
 0x137   :  { %v83_v30 = vmul.f32 %v1911_v27, %v75_v28 }
 0x138   :  { %v2248_v31 = vpop.eup %2247 }
 0x139   :  { %v76_v32 = vmul.f32 %v2248_v31, %v60_v10  ;;  %v91_v33 = vadd.f32 %v1912_v29, %v83_v30 }
 0x13b   :  { %v84_v34 = vmul.f32 %v1911_v27, %v76_v32  ;;  %2033 = vmatprep.mubr.msk.f32.mxu1 %vm48_vm0, %v91_v33 }
 0x13d   :  { %v92_v35 = vadd.f32 %v1912_v29, %v84_v34 }
 0x13f   :  { %2034 = vmatmul.mubr.msk.f32.vlgmr.msra.gmra.mrb[0].mxu1 %vm48_vm0, %v92_v35 }
 0x140   :  { %2038 = vmatprep.mubr.msk.f32.mxu1 %vm2290_vm2, %v2289_v36 }
 0x212   :  { %v2035_v38 = vpop.f32.mrb[0].mxu1 }
 0x213   :  { %v176_v39 = vpop.f32.mrb[1].mxu1  ;;  %v182_v41 = vadd.f32 %v2035_v38, %v1913_v37 }
 0x214   :  { %v2422_v40 = vadd.f32 %v1913_v37, %v176_v39 }
 0x215   :  { %v879_v42 = vrot.slane %v182_v41, 5 }
 0x216   :  { %359 = vrot.lane.b32.xlu1 %v2422_v40, %s2291_s22  ;;  %186 = vrot.lane.b32.xlu0 %v2422_v40, %s2292_s23  ;;  %v878_v43 = vrot.slane %v2422_v40, 5 }
 0x218   :  { %v2431_v44 = vsel %vm877_vm3, %v878_v43, %v879_v42 }
 0x21a   :  { %357 = vrot.lane.b32.xlu1 %v2422_v40, %s2293_s24  ;;  %530 = vrot.lane.b32.xlu0 %v2422_v40, %s2294_s25 }
 0x21e   :  { %532 = vrot.lane.b32.xlu1 %v2422_v40, %s2295_s4  ;;  %703 = vrot.lane.b32.xlu0 %v2422_v40, %s2296_s26 }
 0x222   :  { %705 = vrot.lane.b32.xlu1 %v2422_v40, %s2297_s27  ;;  %1049 = vrot.lane.b32.xlu0 %v2431_v44, %s2291_s22 }
 0x226   :  { %1221 = vrot.lane.b32.xlu0 %v2431_v44, %s2295_s4  ;;  %881 = vrot.lane.b32.xlu1 %v2431_v44, %s2292_s23 }
 0x22a   :  { %1393 = vrot.lane.b32.xlu0 %v2431_v44, %s2297_s27  ;;  %1047 = vrot.lane.b32.xlu1 %v2431_v44, %s2293_s24 }
 0x22e   :  { %1219 = vrot.lane.b32.xlu1 %v2431_v44, %s2294_s25 }
 0x232   :  { %1391 = vrot.lane.b32.xlu1 %v2431_v44, %s2296_s26 }
 0x288   :  { %v360_v45 = vpop.permute.xlu1 %359  ;;  %v187_v46 = vpop.permute.xlu0 %186 }
 0x289   :  { %2037 = vmatpush3.xpose.msk.msra.mxu1 %vm188_vm4, %v187_v46  ;;  %2047 = vmatpush3.xpose.msk.msra.mxu0 %vm188_vm4, %v360_v45 }
 0x28a   :  { %2056 = vmatprep.subr.mxu0 %v2289_v36  ;;  %2041 = vmatprep.subr.mxu1 %v2289_v36 }
 0x28c   :  { %v358_v47 = vpop.permute.xlu1 %357  ;;  %2039 = vmatmul.mubr.msk.f32.vlgmr.msra.gmra.mrb[2].mxu1 %vm188_vm4, %v2422_v40  ;;  %v531_v48 = vpop.permute.xlu0 %530 }
 0x28d   :  { %2049 = vmatmul.mubr.msk.f32.vlgmr.msra.gmra.mrb[0].mxu0 %vm188_vm4, %v358_v47  ;;  %2043 = vmatprep.mubr.msk.f32.mxu1 %vm2290_vm2, %v2289_v36 }
 0x28e   :  { %2058 = vmatprep.mubr.msk.f32.mxu0 %vm2290_vm2, %v2289_v36 }
 0x290   :  { %v533_v49 = vpop.permute.xlu1 %532  ;;  %v704_v50 = vpop.permute.xlu0 %703 }
 0x291   :  { %2057 = vmatpush3.xpose.msk.msra.mxu0 %vm188_vm4, %v533_v49 }
 0x292   :  { %2066 = vmatprep.subr.mxu0 %v2289_v36 }
 0x294   :  { %v706_v51 = vpop.permute.xlu1 %705  ;;  %2059 = vmatmul.mubr.msk.f32.vlgmr.msra.gmra.mrb[2].mxu0 %vm188_vm4, %v531_v48  ;;  %v1050_v52 = vpop.permute.xlu0 %1049 }
 0x295   :  { %2067 = vmatpush3.xpose.msk.msra.mxu0 %vm188_vm4, %v706_v51  ;;  %2068 = vmatprep.mubr.msk.f32.mxu0 %vm2290_vm2, %v2289_v36 }
 0x296   :  { %2076 = vmatprep.subr.mxu0 %v2289_v36 }
 0x298   :  { %2069 = vmatmul.mubr.msk.f32.vlgmr.msra.gmra.mrb[4].mxu0 %vm188_vm4, %v704_v50  ;;  %v882_v53 = vpop.permute.xlu1 %881  ;;  %v1222_v55 = vpop.permute.xlu0 %1221 }
 0x299   :  { %2077 = vmatpush3.xpose.msk.msra.mxu0 %vm188_vm4, %v882_v53  ;;  %2078 = vmatprep.mubr.msk.f32.mxu0 %vm2290_vm2, %v2289_v36 }
 0x29a   :  { %2086 = vmatprep.subr.mxu0 %v2289_v36 }
 0x29c   :  { %2079 = vmatmul.mubr.msk.f32.vlgmr.msra.gmra.mrb[6].mxu0 %vm188_vm4, %v2431_v44  ;;  %v1048_v54 = vpop.permute.xlu1 %1047  ;;  %v1394_v57 = vpop.permute.xlu0 %1393 }
 0x29d   :  { %2087 = vmatpush3.xpose.msk.msra.mxu0 %vm188_vm4, %v1050_v52  ;;  %2088 = vmatprep.mubr.msk.f32.mxu0 %vm2290_vm2, %v2289_v36 }
 0x29e   :  { %2096 = vmatprep.subr.mxu0 %v2289_v36 }
 0x2a0   :  { %2089 = vmatmul.mubr.msk.f32.vlgmr.msra.gmra.mrb[8].mxu0 %vm188_vm4, %v1048_v54  ;;  %v1220_v56 = vpop.permute.xlu1 %1219 }
 0x2a1   :  { %2097 = vmatpush3.xpose.msk.msra.mxu0 %vm188_vm4, %v1222_v55  ;;  %2098 = vmatprep.mubr.msk.f32.mxu0 %vm2290_vm2, %v2289_v36 }
 0x2a2   :  { %2106 = vmatprep.subr.mxu0 %v2289_v36 }
 0x2a4   :  { %2099 = vmatmul.mubr.msk.f32.vlgmr.msra.gmra.mrb[10].mxu0 %vm188_vm4, %v1220_v56  ;;  %v1392_v58 = vpop.permute.xlu1 %1391 }
 0x2a5   :  { %2107 = vmatpush3.xpose.msk.msra.mxu0 %vm188_vm4, %v1394_v57  ;;  %2108 = vmatprep.mubr.msk.f32.mxu0 %vm2290_vm2, %v2289_v36 }
 0x2a8   :  { %2109 = vmatmul.mubr.msk.f32.vlgmr.msra.gmra.mrb[12].mxu0 %vm188_vm4, %v1392_v58 }
 0x35f   :  { %v259_v59 = vpop.f32.mrb[2].mxu1 }
 0x360   :  { %v263_v60 = vmul.f32 0.35355338, %v259_v59  ;;  %v2040_v61 = vpop.f32.mrb[3].mxu1  ;;  %v431_v62 = vpop.f32.mrb[0].mxu0 }
 0x361   :  { %v435_v63 = vmul.f32 0.35355338, %v431_v62  ;;  %v2050_v2 = vpop.f32.mrb[1].mxu0 }
 0x362   :  { %v265_v3 = vsel %vm264_vm5, %v263_v60, -inf }
 0x363   :  { %266 = vmax.xlane.f32.xlu0 %v265_v3  ;;  %v436_v4 = vsel %vm264_vm5, %v435_v63, -inf }
 0x364   :  { %437 = vmax.xlane.f32.xlu1 %v436_v4 }
 0x367   :  { %v604_v5 = vpop.f32.mrb[2].mxu0 }
 0x368   :  { %v2482_v6 = vmul.f32 0.35355338, %v604_v5  ;;  %v2060_v7 = vpop.f32.mrb[3].mxu0 }
 0x36a   :  { %v609_v8 = vsel %vm264_vm5, %v2482_v6, -inf }
 0x36b   :  { %v777_v9 = vpop.f32.mrb[4].mxu0  ;;  %610 = vmax.xlane.f32.xlu0 %v609_v8 }
 0x36c   :  { %v781_v10 = vmul.f32 0.35355338, %v777_v9  ;;  %v2070_v11 = vpop.f32.mrb[5].mxu0 }
 0x36e   :  { %v782_v12 = vsel %vm264_vm5, %v781_v10, -inf }
 0x36f   :  { %783 = vmax.xlane.f32.xlu0 %v782_v12  ;;  %v953_v13 = vpop.f32.mrb[6].mxu0 }
 0x370   :  { %v957_v14 = vmul.f32 0.35355338, %v953_v13  ;;  %v2080_v15 = vpop.f32.mrb[7].mxu0 }
 0x372   :  { %v958_v16 = vsel %vm264_vm5, %v957_v14, -inf }
 0x373   :  { %959 = vmax.xlane.f32.xlu0 %v958_v16  ;;  %v1121_v17 = vpop.f32.mrb[8].mxu0 }
 0x374   :  { %v1125_v18 = vmul.f32 0.35355338, %v1121_v17  ;;  %v2090_v19 = vpop.f32.mrb[9].mxu0 }
 0x376   :  { %v1126_v20 = vsel %vm264_vm5, %v1125_v18, -inf }
 0x377   :  { %1127 = vmax.xlane.f32.xlu1 %v1126_v20  ;;  %v1293_v21 = vpop.f32.mrb[10].mxu0 }
 0x378   :  { %v1297_v22 = vmul.f32 0.35355338, %v1293_v21  ;;  %v2100_v23 = vpop.f32.mrb[11].mxu0 }
 0x37a   :  { %v1298_v24 = vsel %vm264_vm5, %v1297_v22, -inf }
 0x37b   :  { %1299 = vmax.xlane.f32.xlu0 %v1298_v24  ;;  %v1465_v25 = vpop.f32.mrb[12].mxu0 }
 0x37c   :  { %v2110_v26 = vpop.f32.mrb[13].mxu0  ;;  %v1469_v27 = vmul.f32 0.35355338, %v1465_v25 }
 0x37e   :  { %v1470_v28 = vsel %vm264_vm5, %v1469_v27, -inf }
 0x388   :  { %276 = vrot.lane.b32.xlu1 %v2422_v40, %s2298_s28 }
 0x3ac   :  { %1471 = vmax.xlane.f32.xlu1 %v1470_v28 }
 0x3bd   :  { %620 = vrot.lane.b32.xlu1 %v2422_v40, %s2299_s0 }
 0x3c1   :  { %793 = vrot.lane.b32.xlu1 %v2422_v40, %s2300_s29 }
 0x3c5   :  { %969 = vrot.lane.b32.xlu1 %v2431_v44, %s2298_s28 }
 0x3f0   :  { %v267_v29 = vpop.xlane.xlu0 %266 }
 0x3f1   :  { %v268_v30 = vsub.f32 %v263_v60, %v267_v29  ;;  %v438_v31 = vpop.xlane.xlu1 %437 }
 0x3f2   :  { %v439_v32 = vsub.f32 %v435_v63, %v438_v31 }
 0x3f3   :  { %v269_v33 = vmul.f32 1.442695, %v268_v30 }
 0x3f4   :  { %v440_v34 = vmul.f32 1.442695, %v439_v32 }
 0x3f5   :  { %2249 = vpow2.f32 %v269_v33 }
 0x3f6   :  { %2251 = vpow2.f32 %v440_v34 }
 0x3f8   :  { %v611_v35 = vpop.xlane.xlu0 %610 }
 0x3f9   :  { %v612_v50 = vsub.f32 %v2482_v6, %v611_v35 }
 0x3fb   :  { %v613_v52 = vmul.f32 1.442695, %v612_v50  ;;  %v1565_v50 = vld [vmem:[%s2695_s5] sm:$0xff] }
 0x3fc   :  { %v784_v37 = vpop.xlane.xlu0 %783 }
 0x3fd   :  { %v785_v38 = vsub.f32 %v781_v10, %v784_v37 }
 0x3ff   :  { %v2497_v39 = vpop.eup %2249  ;;  %v786_v41 = vmul.f32 1.442695, %v785_v38 }
 0x400   :  { %v2499_v42 = vpop.eup %2251  ;;  %v271_v43 = vsel %vm264_vm5, %v2497_v39, 0.0  ;;  %v960_v51 = vpop.xlane.xlu0 %959 }
 0x401   :  { %2253 = vpow2.f32 %v786_v41  ;;  %272 = vadd.xlane.f32.xlu0 %v271_v43  ;;  %v442_v45 = vsel %vm264_vm5, %v2499_v42, 0.0  ;;  %v961_v53 = vsub.f32 %v957_v14, %v960_v51  ;;  %v1566_v51 = vld [vmem:[%s2695_s5 + $0x8] sm:$0xff] }
 0x402   :  { %443 = vadd.xlane.f32.xlu1 %v442_v45  ;;  %2255 = vpow2.f32 %v613_v52 }
 0x403   :  { %v962_v55 = vmul.f32 1.442695, %v961_v53  ;;  %v2181_v53 = vpack.c.bf16 %v1566_v51, %v1565_v50  ;;  %v1952_v51 = vld [vmem:[%s2700_s8] ss:$0 sm:$0xff] }
 0x404   :  { %v1128_v46 = vpop.xlane.xlu1 %1127 }
 0x405   :  { %2257 = vpow2.f32 %v962_v55  ;;  %v1129_v57 = vsub.f32 %v1125_v18, %v1128_v46  ;;  %v1568_v55 = vld [vmem:[%s2695_s5 + $0x18] sm:$0xff] }
 0x407   :  { %v1130_v59 = vmul.f32 1.442695, %v1129_v57 }
 0x408   :  { %v277_v47 = vpop.permute.xlu1 %276  ;;  %v1300_v54 = vpop.xlane.xlu0 %1299 }
 0x409   :  { %2042 = vmatpush3.msk.msra.mxu1 %vm282_vm6, %v277_v47  ;;  %v1301_v56 = vsub.f32 %v1297_v22, %v1300_v54  ;;  %v1567_v54 = vld [vmem:[%s2695_s5 + $0x10] sm:$0xff] }
 0x40a   :  { %2051 = vmatprep.subr.mxu1 %v2289_v36  ;;  %v2185_v57 = vpack.c.bf16 %v1568_v55, %v1567_v54 }
 0x40b   :  { %v2507_v48 = vpop.eup %2253  ;;  %v1302_v58 = vmul.f32 1.442695, %v1301_v56 }
 0x40c   :  { %v788_v49 = vsel %vm264_vm5, %v2507_v48, 0.0  ;;  %v2256_v60 = vpop.eup %2255 }
 0x40d   :  { %789 = vadd.xlane.f32.xlu1 %v788_v49  ;;  %2259 = vpow2.f32 %v1302_v58 }
 0x40e   :  { %2261 = vpow2.f32 %v1130_v59 }
 0x40f   :  { %v2515_v61 = vpop.eup %2257 }
 0x410   :  { %v964_v63 = vsel %vm264_vm5, %v2515_v61, 0.0 }
 0x417   :  { %447 = vrot.lane.b32.xlu0 %v2422_v40, %s2301_s30  ;;  %v615_v40 = vsel %vm264_vm5, %v2256_v60, 0.0  ;;  %v2519_v2 = vpop.eup %2259 }
 0x418   :  { %v1304_v5 = vsel %vm264_vm5, %v2519_v2, 0.0  ;;  %v2262_v6 = vpop.eup %2261 }
 0x419   :  { %v1132_v7 = vsel %vm264_vm5, %v2262_v6, 0.0 }
 0x41e   :  { %1137 = vrot.lane.b32.xlu1 %v2431_v44, %s2301_s30 }
 0x436   :  { %616 = vadd.xlane.f32.xlu0 %v615_v40 }
 0x439   :  { %v1472_v62 = vpop.xlane.xlu1 %1471 }
 0x43a   :  { %v1473_v3 = vsub.f32 %v1469_v27, %v1472_v62  ;;  %965 = vadd.xlane.f32.xlu0 %v964_v63 }
 0x43c   :  { %v1474_v4 = vmul.f32 1.442695, %v1473_v3 }
 0x43d   :  { %v621_v10 = vpop.permute.xlu1 %620 }
 0x43e   :  { %2263 = vpow2.f32 %v1474_v4  ;;  %1305 = vadd.xlane.f32.xlu0 %v1304_v5 }
 0x441   :  { %v794_v11 = vpop.permute.xlu1 %793 }
 0x442   :  { %1133 = vadd.xlane.f32.xlu1 %v1132_v7 }
 0x445   :  { %v970_v12 = vpop.permute.xlu1 %969 }
 0x448   :  { %v2524_v8 = vpop.eup %2263 }
 0x449   :  { %v1476_v9 = vsel %vm264_vm5, %v2524_v8, 0.0 }
 0x44a   :  { %1477 = vadd.xlane.f32.xlu0 %v1476_v9  ;;  %v1948_v9 = vld [vmem:[%s2696_s6] ss:$0 sm:$0xff] }
 0x453   :  { %1481 = vrot.lane.b32.xlu1 %v2431_v44, %s2300_s29 }
 0x460   :  { %1309 = vrot.lane.b32.xlu0 %v2431_v44, %s2299_s0 }
 0x48e   :  { %v273_v13 = vpop.xlane.xlu0 %272 }
 0x48f   :  { %2265 = vrcp.f32 %v273_v13  ;;  %v444_v14 = vpop.xlane.xlu1 %443 }
 0x490   :  { %2267 = vrcp.f32 %v444_v14 }
 0x492   :  { %v448_v18 = vpop.permute.xlu0 %447 }
 0x499   :  { %v2266_v15 = vpop.eup %2265 }
 0x49a   :  { %v275_v16 = vmul.f32 %v2266_v15, %v2497_v39  ;;  %v2268_v17 = vpop.eup %2267  ;;  %v790_v19 = vpop.xlane.xlu1 %789 }
 0x49b   :  { %v446_v44 = vmul.f32 %v2268_v17, %v2499_v42 }
 0x49c   :  { %2044 = vmatmul.mubr.msk.f32.vlgmr.msra.gmra.mrb[4].mxu1 %vm278_vm7, %v275_v16 }
 0x49d   :  { %2052 = vmatpush3.msk.msra.mxu1 %vm282_vm6, %v448_v18  ;;  %2053 = vmatprep.mubr.msk.f32.mxu1 %vm2290_vm2, %v2289_v36 }
 0x49e   :  { %2061 = vmatprep.subr.mxu1 %v2289_v36  ;;  %v1138_v22 = vpop.permute.xlu1 %1137 }
 0x4a0   :  { %2054 = vmatmul.mubr.msk.f32.vlgmr.msra.gmra.mrb[6].mxu1 %vm278_vm7, %v446_v44 }
 0x4a1   :  { %2062 = vmatpush3.msk.msra.mxu1 %vm282_vm6, %v621_v10  ;;  %2063 = vmatprep.mubr.msk.f32.mxu1 %vm2290_vm2, %v2289_v36 }
 0x4a2   :  { %2071 = vmatprep.subr.mxu1 %v2289_v36 }
 0x4c3   :  { %v617_v20 = vpop.xlane.xlu0 %616 }
 0x4c4   :  { %2269 = vrcp.f32 %v617_v20 }
 0x4c5   :  { %2271 = vrcp.f32 %v790_v19 }
 0x4c7   :  { %v966_v21 = vpop.xlane.xlu0 %965 }
 0x4c8   :  { %2273 = vrcp.f32 %v966_v21 }
 0x4cb   :  { %v1306_v25 = vpop.xlane.xlu0 %1305 }
 0x4ce   :  { %v2270_v23 = vpop.eup %2269 }
 0x4cf   :  { %v619_v24 = vmul.f32 %v2270_v23, %v2256_v60  ;;  %v1134_v26 = vpop.xlane.xlu1 %1133  ;;  %v2272_v27 = vpop.eup %2271 }
 0x4d0   :  { %2275 = vrcp.f32 %v1134_v26  ;;  %v792_v28 = vmul.f32 %v2272_v27, %v2507_v48  ;;  %v1704_v26 = vld [vmem:[%s2697_s9 + $0x8] sm:$0xff] }
 0x4d1   :  { %2064 = vmatmul.mubr.msk.f32.vlgmr.msra.gmra.mrb[8].mxu1 %vm278_vm7, %v619_v24  ;;  %2277 = vrcp.f32 %v1306_v25  ;;  %v1703_v25 = vld [vmem:[%s2697_s9] sm:$0xff] }
 0x4d2   :  { %2072 = vmatpush3.msk.msra.mxu1 %vm282_vm6, %v794_v11  ;;  %2073 = vmatprep.mubr.msk.f32.mxu1 %vm2290_vm2, %v2289_v36  ;;  %v2274_v29 = vpop.eup %2273  ;;  %v2189_v27 = vpack.c.bf16 %v1704_v26, %v1703_v25 }
 0x4d3   :  { %2081 = vmatprep.subr.mxu1 %v2289_v36  ;;  %v968_v30 = vmul.f32 %v2274_v29, %v2515_v61  ;;  %v1482_v38 = vpop.permute.xlu1 %1481  ;;  %v1706_v29 = vld [vmem:[%s2697_s9 + $0x18] sm:$0xff] }
 0x4d5   :  { %2074 = vmatmul.mubr.msk.f32.vlgmr.msra.gmra.mrb[10].mxu1 %vm278_vm7, %v792_v28  ;;  %v1705_v28 = vld [vmem:[%s2697_s9 + $0x10] sm:$0xff] }
 0x4d6   :  { %2082 = vmatpush3.msk.msra.mxu1 %vm282_vm6, %v970_v12  ;;  %2083 = vmatprep.mubr.msk.f32.mxu1 %vm2290_vm2, %v2289_v36 }
 0x4d7   :  { %v1478_v31 = vpop.xlane.xlu0 %1477  ;;  %2091 = vmatprep.subr.mxu1 %v2289_v36 }
 0x4d8   :  { %2279 = vrcp.f32 %v1478_v31  ;;  %v1805_v31 = vld [vmem:[%s2698_s11] sm:$0xff] }
 0x4d9   :  { %2084 = vmatmul.mubr.msk.f32.vlgmr.msra.gmra.mrb[12].mxu1 %vm278_vm7, %v968_v30  ;;  %v2193_v30 = vpack.c.bf16 %v1706_v29, %v1705_v28 }
 0x4da   :  { %v2276_v32 = vpop.eup %2275  ;;  %2092 = vmatpush3.msk.msra.mxu1 %vm282_vm6, %v1138_v22  ;;  %2093 = vmatprep.mubr.msk.f32.mxu1 %vm2290_vm2, %v2289_v36 }
 0x4db   :  { %v1136_v33 = vmul.f32 %v2276_v32, %v2262_v6  ;;  %v1310_v34 = vpop.permute.xlu0 %1309  ;;  %2101 = vmatprep.subr.mxu1 %v2289_v36  ;;  %v2278_v35 = vpop.eup %2277  ;;  %v1806_v32 = vld [vmem:[%s2698_s11 + $0x8] sm:$0xff] }
 0x4dc   :  { %v1308_v37 = vmul.f32 %v2278_v35, %v2519_v2  ;;  %v1808_v35 = vld [vmem:[%s2698_s11 + $0x18] sm:$0xff] }
 0x4dd   :  { %2094 = vmatmul.mubr.msk.f32.vlgmr.msra.gmra.mrb[14].mxu1 %vm278_vm7, %v1136_v33  ;;  %v1807_v33 = vld [vmem:[%s2698_s11 + $0x10] sm:$0xff] }
 0x4de   :  { %2102 = vmatpush3.msk.msra.mxu1 %vm282_vm6, %v1310_v34  ;;  %2103 = vmatprep.mubr.msk.f32.mxu1 %vm2290_vm2, %v2289_v36  ;;  %v2197_v34 = vpack.c.bf16 %v1806_v32, %v1805_v31 }
 0x4df   :  { %2111 = vmatprep.subr.mxu1 %v2289_v36 }
 0x4e0   :  { %2198 = vmatprep.subr.bf16.mxu0 %v2197_v34 }
 0x4e1   :  { %2104 = vmatmul.mubr.msk.f32.vlgmr.msra.gmra.mrb[16].mxu1 %vm278_vm7, %v1308_v37  ;;  %v2201_v37 = vpack.c.bf16 %v1808_v35, %v1807_v33  ;;  %2200 = vmatpush3.bf16.msra.mxu0 %v2197_v34 }
 0x4e2   :  { %v2280_v39 = vpop.eup %2279  ;;  %2112 = vmatpush3.msk.msra.mxu1 %vm282_vm6, %v1482_v38  ;;  %2113 = vmatprep.mubr.msk.f32.mxu1 %vm2290_vm2, %v2289_v36  ;;  %v1809_v38 = vld [vmem:[%s2698_s11 + $0x20] sm:$0xff] }
 0x4e3   :  { %v1480_v41 = vmul.f32 %v2280_v39, %v2524_v8  ;;  %2182 = vmatprep.subr.bf16.mxu1 %v2181_v53  ;;  %v1810_v39 = vld [vmem:[%s2698_s11 + $0x28] sm:$0xff]  ;;  %2202 = vmatprep.subr.bf16.mxu0 %v2201_v37 }
 0x4e5   :  { %2114 = vmatmul.mubr.msk.f32.vlgmr.msra.gmra.mrb[18].mxu1 %vm278_vm7, %v1480_v41  ;;  %v2205_v41 = vpack.c.bf16 %v1810_v39, %v1809_v38  ;;  %2204 = vmatpush3.bf16.msra.mxu0 %v2201_v37 }
 0x4e6   :  { %2184 = vmatpush3.bf16.msra.mxu1 %v2181_v53 }
 0x4e7   :  { %2186 = vmatprep.subr.bf16.mxu1 %v2185_v57  ;;  %2206 = vmatprep.subr.bf16.mxu0 %v2205_v41 }
 0x4e9   :  { %2208 = vmatpush3.bf16.msra.mxu0 %v2205_v41 }
 0x4ea   :  { %2188 = vmatpush3.bf16.msra.mxu1 %v2185_v57 }
 0x4eb   :  { %2190 = vmatprep.subr.bf16.mxu1 %v2189_v27 }
 0x56f   :  { %v351_v42 = vpop.f32.mrb[4].mxu1 }
 0x570   :  { %356 = vst.msk [vmem:[#allocation2] sm:$0x1f] %vm355_vm8, %v351_v42  ;;  %v2045_v43 = vpop.f32.mrb[5].mxu1 }
 0x573   :  { %v520_v45 = vpop.f32.mrb[6].mxu1 }
 0x574   :  { %525 = vrot.lane.b32.xlu0 %v520_v45, %s2302_s14  ;;  %v2055_v46 = vpop.f32.mrb[7].mxu1 }
 0x5a4   :  { %v693_v47 = vpop.f32.mrb[8].mxu1 }
 0x5a5   :  { %698 = vrot.lane.b32.xlu0 %v693_v47, %s2303_s15  ;;  %v2065_v48 = vpop.f32.mrb[9].mxu1 }
 0x5a8   :  { %v866_v49 = vpop.f32.mrb[10].mxu1 }
 0x5a9   :  { %871 = vrot.lane.b32.xlu0 %v866_v49, %s2304_s16  ;;  %v2075_v36 = vpop.f32.mrb[11].mxu1 }
 0x5aa   :  { %v1951_v36 = vld [vmem:[%s2699_s7] ss:$0 sm:$0xff] }
 0x5ac   :  { %v1042_v52 = vpop.f32.mrb[12].mxu1 }
 0x5ad   :  { %1046 = vst.msk [vmem:[#allocation2 + $0x5] sm:$0x1f] %vm355_vm8, %v1042_v52  ;;  %v2085_v56 = vpop.f32.mrb[13].mxu1 }
 0x5b0   :  { %v1210_v58 = vpop.f32.mrb[14].mxu1 }
 0x5b1   :  { %1215 = vrot.lane.b32.xlu1 %v1210_v58, %s2302_s14  ;;  %v2095_v59 = vpop.f32.mrb[15].mxu1  ;;  %v1811_v58 = vld [vmem:[%s2698_s11 + $0x30] sm:$0xff] }
 0x5b2   :  { %v1812_v59 = vld [vmem:[%s2698_s11 + $0x38] sm:$0xff] }
 0x5b4   :  { %v1382_v60 = vpop.f32.mrb[16].mxu1 }
 0x5b5   :  { %1387 = vrot.lane.b32.xlu1 %v1382_v60, %s2303_s15  ;;  %v2105_v40 = vpop.f32.mrb[17].mxu1  ;;  %v2209_v60 = vpack.c.bf16 %v1812_v59, %v1811_v58 }
 0x5b6   :  { %v1813_v40 = vld [vmem:[%s2698_s11 + $0x40] sm:$0xff] }
 0x5b7   :  { %2210 = vmatprep.subr.bf16.mxu0 %v2209_v60 }
 0x5b8   :  { %v1554_v61 = vpop.f32.mrb[18].mxu1  ;;  %2212 = vmatpush3.bf16.msra.mxu0 %v2209_v60 }
 0x5b9   :  { %1559 = vrot.lane.b32.xlu1 %v1554_v61, %s2304_s16  ;;  %v2115_v62 = vpop.f32.mrb[19].mxu1  ;;  %v1814_v61 = vld [vmem:[%s2698_s11 + $0x48] sm:$0xff] }
 0x5ba   :  { %v2213_v62 = vpack.c.bf16 %v1814_v61, %v1813_v40 }
 0x5bc   :  { %2214 = vmatprep.subr.bf16.mxu0 %v2213_v62 }
 0x5bd   :  { %2216 = vmatpush3.bf16.msra.mxu0 %v2213_v62 }
 0x5e6   :  { %v526_v63 = vpop.permute.xlu0 %525 }
 0x5e7   :  { %529 = vst.msk [vmem:[#allocation2] sm:$0x1f] %vm528_vm9, %v526_v63  ;;  %v1815_v63 = vld [vmem:[%s2698_s11 + $0x50] sm:$0xff] }
 0x617   :  { %v699_v2 = vpop.permute.xlu0 %698 }
 0x618   :  { %702 = vst.msk [vmem:[#allocation2] sm:$0x1f] %vm701_vm10, %v699_v2  ;;  %v1816_v2 = vld [vmem:[%s2698_s11 + $0x58] sm:$0xff] }
 0x61b   :  { %v872_v3 = vpop.permute.xlu0 %871 }
 0x61c   :  { %875 = vst.msk [vmem:[#allocation2] sm:$0x1f] %vm874_vm11, %v872_v3  ;;  %v2217_v3 = vpack.c.bf16 %v1816_v2, %v1815_v63 }
 0x61e   :  { %2218 = vmatprep.subr.bf16.mxu0 %v2217_v3 }
 0x61f   :  { %2220 = vmatpush3.bf16.msra.mxu0 %v2217_v3 }
 0x623   :  { %v1216_v4 = vpop.permute.xlu1 %1215 }
 0x624   :  { %1218 = vst.msk [vmem:[#allocation2 + $0x5] sm:$0x1f] %vm528_vm9, %v1216_v4  ;;  %v1817_v4 = vld [vmem:[%s2698_s11 + $0x60] sm:$0xff] }
 0x627   :  { %v1388_v5 = vpop.permute.xlu1 %1387 }
 0x628   :  { %1390 = vst.msk [vmem:[#allocation2 + $0x5] sm:$0x1f] %vm701_vm10, %v1388_v5  ;;  %v1818_v5 = vld [vmem:[%s2698_s11 + $0x68] sm:$0xff] }
 0x62b   :  { %v1560_v6 = vpop.permute.xlu1 %1559 }
 0x62c   :  { %1562 = vst.msk [vmem:[#allocation2 + $0x5] sm:$0x1f] %vm874_vm11, %v1560_v6  ;;  %v2221_v6 = vpack.c.bf16 %v1818_v5, %v1817_v4 }
 0x62e   :  { %2222 = vmatprep.subr.bf16.mxu0 %v2221_v6 }
 0x62f   :  { %2224 = vmatpush3.bf16.msra.mxu0 %v2221_v6 }
 0x633   :  { %v1563_v7 = vld [vmem:[#allocation2] sm:$0xff]  ;;  %v1564_v8 = vld [vmem:[#allocation2 + $0x8] sm:$0x3] }
 0x634   :  { %2124 = vmatprep.mubr.msk.f32.mxu1 %vm48_vm0, %v1563_v7  ;;  %v1819_v7 = vld [vmem:[%s2698_s11 + $0x70] sm:$0xff] }
 0x635   :  { %2125 = vmatmul.mubr.msk.f32.vlgmr.msra.gmra.mrb[20].mxu1 %vm48_vm0, %v1564_v8  ;;  %v1820_v8 = vld [vmem:[%s2698_s11 + $0x78] sm:$0xff] }
 0x636   :  { %2192 = vmatpush3.bf16.msra.mxu1 %v2189_v27 }
 0x637   :  { %2194 = vmatprep.subr.bf16.mxu1 %v2193_v30 }
 0x63a   :  { %2196 = vmatpush3.bf16.msra.mxu1 %v2193_v30 }
 0x708   :  { %v2126_v10 = vpop.f32.mrb[20].mxu1 }
 0x709   :  { %v1654_v11 = vadd.f32 %v2126_v10, %v1948_v9  ;;  %v1648_v12 = vpop.f32.mrb[21].mxu1  ;;  %v1953_v10 = vld [vmem:[%s2701_s10] ss:$0 sm:$0xff] }
 0x70a   :  { %v1649_v13 = vadd.f32 %v1948_v9, %v1648_v12  ;;  %v2225_v9 = vpack.c.bf16 %v1820_v8, %v1819_v7 }
 0x70b   :  { %v2593_v14 = vadd.f32 %v1654_v11, %v2383_v1 }
 0x70c   :  { %v2596_v15 = vadd.f32 %v1649_v13, %v2378_v0  ;;  %2226 = vmatprep.subr.bf16.mxu0 %v2225_v9 }
 0x70d   :  { %v1664_v16 = vsel %vm52_vm1, %v2593_v14, 0.0  ;;  %2228 = vmatpush3.bf16.msra.mxu0 %v2225_v9 }
 0x70e   :  { %1665 = vadd.xlane.f32.xlu1 %v1664_v16  ;;  %v1661_v17 = vsel %vm48_vm0, %v2596_v15, 0.0 }
 0x70f   :  { %1662 = vadd.xlane.f32.xlu0 %v1661_v17 }
 0x79b   :  { %v1666_v18 = vpop.xlane.xlu1 %1665 }
 0x79c   :  { %v1668_v44 = vmul.f32 0.03125, %v1666_v18  ;;  %v1663_v19 = vpop.xlane.xlu0 %1662 }
 0x79d   :  { %v1667_v20 = vmul.f32 0.03125, %v1663_v19 }
 0x79e   :  { %v1670_v21 = vsub.f32 %v2593_v14, %v1668_v44 }
 0x79f   :  { %v1669_v1 = vsub.f32 %v2596_v15, %v1667_v20 }
 0x7a0   :  { %v1672_v23 = vmul.f32 %v1670_v21, %v1670_v21 }
 0x7a1   :  { %v1671_v22 = vmul.f32 %v1669_v1, %v1669_v1 }
 0x7a2   :  { %v1676_v24 = vsel %vm52_vm1, %v1672_v23, 0.0 }
 0x7a3   :  { %v1673_v0 = vsel %vm48_vm0, %v1671_v22, 0.0 }
 0x7a4   :  { %1674 = vadd.xlane.f32.xlu0 %v1673_v0 }
 0x7a8   :  { %1677 = vadd.xlane.f32.xlu0 %v1676_v24  ;;  %v1956_v24 = vld [vmem:[%s2702_s12] ss:$0 sm:$0xff] }
 0x831   :  { %v1675_v42 = vpop.xlane.xlu0 %1674 }
 0x832   :  { %v1679_v43 = vmul.f32 0.03125, %v1675_v42 }
 0x834   :  { %v1681_v45 = vadd.f32 1e-06, %v1679_v43 }
 0x835   :  { %v1678_v46 = vpop.xlane.xlu0 %1677 }
 0x836   :  { %2281 = vrsqrt.f32 %v1681_v45  ;;  %v1680_v47 = vmul.f32 0.03125, %v1678_v46 }
 0x838   :  { %v1682_v48 = vadd.f32 1e-06, %v1680_v47 }
 0x83a   :  { %2283 = vrsqrt.f32 %v1682_v48 }
 0x840   :  { %v2282_v49 = vpop.eup %2281 }
 0x841   :  { %v1685_v50 = vmul.f32 %v2282_v49, %v1669_v1 }
 0x843   :  { %v1693_v52 = vmul.f32 %v1951_v36, %v1685_v50 }
 0x844   :  { %v2284_v53 = vpop.eup %2283 }
 0x845   :  { %v1686_v54 = vmul.f32 %v2284_v53, %v1670_v21  ;;  %v1701_v55 = vadd.f32 %v1952_v51, %v1693_v52 }
 0x847   :  { %v1694_v56 = vmul.f32 %v1951_v36, %v1686_v54  ;;  %2135 = vmatprep.mubr.msk.f32.mxu1 %vm48_vm0, %v1701_v55 }
 0x849   :  { %v1702_v57 = vadd.f32 %v1952_v51, %v1694_v56 }
 0x84b   :  { %2136 = vmatmul.mubr.msk.f32.vlgmr.msra.gmra.mrb[22].mxu1 %vm48_vm0, %v1702_v57 }
 0x91e   :  { %v2137_v11 = vpop.f32.mrb[22].mxu1 }
 0x91f   :  { %v1792_v12 = vadd.f32 %v2137_v11, %v1953_v10  ;;  %v1786_v13 = vpop.f32.mrb[23].mxu1 }
 0x920   :  { %v1787_v16 = vadd.f32 %v1953_v10, %v1786_v13 }
 0x921   :  { %v1798_v17 = vmul.f32 0.70710677, %v1792_v12  ;;  %v1796_v22 = vmul.f32 0.5, %v1792_v12 }
 0x922   :  { %v1797_v18 = vmul.f32 0.70710677, %v1787_v16  ;;  %v1795_v21 = vmul.f32 0.5, %v1787_v16 }
 0x923   :  { %2285 = verf.f32 %v1798_v17 }
 0x924   :  { %2287 = verf.f32 %v1797_v18 }
 0x92d   :  { %v2286_v44 = vpop.eup %2285 }
 0x92e   :  { %v2288_v19 = vpop.eup %2287  ;;  %v1802_v20 = vadd.f32 1.0, %v2286_v44 }
 0x92f   :  { %v1801_v1 = vadd.f32 1.0, %v2288_v19 }
 0x930   :  { %v1804_v23 = vmul.f32 %v1802_v20, %v1796_v22 }
 0x931   :  { %v1803_v0 = vmul.f32 %v1801_v1, %v1795_v21 }
 0x933   :  { %2170 = vmatprep.mubr.f32.mxu0 %v1803_v0 }
 0x934   :  { %2171 = vmatmul.mubr.f32.vlgmr.msra.gmra.mrb[14].mxu0 %v1804_v23 }
 0xa07   :  { %v2172_v25 = vpop.f32.mrb[14].mxu0 }
 0xa08   :  { %v1900_v26 = vadd.f32 %v2172_v25, %v1956_v24  ;;  %v1894_v27 = vpop.f32.mrb[15].mxu0 }
 0xa09   :  { %v1895_v28 = vadd.f32 %v1956_v24, %v1894_v27 }
 0xa0a   :  { %v1904_v29 = vadd.f32 %v1900_v26, %v2593_v14 }
 0xa0b   :  { %v1903_v30 = vadd.f32 %v1895_v28, %v2596_v15 }
 0xa0c   :  { %1906 = vst.msk [vmem:[%s2703_s13 + $0x8] sm:$0x3] %vm52_vm1, %v1904_v29 }
 0xa0d   :  { %1905 = vst.msk [vmem:[%s2703_s13] sm:$0xff] %vm48_vm0, %v1903_v30 }

</bundles_post_ra>
